<compile_context>
chip_gen: v7x
topology: tpu7x:2x2x1
jax: 0.10.0
libtpu: 0.0.40
codegen_flags: <defaults>
</compile_context>

<pallas_src>
import math
import functools

import jax
import jax.numpy as jnp
from jax.experimental import pallas as pl
from jax.experimental.pallas import tpu as pltpu


# ----------------------------- helpers -------------------------------------


def _device_kind():
    try:
        return jax.devices()[0].device_kind.lower()
    except Exception:
        return ""


def _vmem_limit_bytes(kind):
    # v7x: 64 MiB VMEM per TensorCore -> leave headroom for Mosaic internal
    # scratch / pipeline buffers.  v5e/v6e: 128 MiB physical, allow bigger tiles.
    if "v7" in kind:
        return 48 * 1024 * 1024
    if "v5" in kind or "v6" in kind:
        return 96 * 1024 * 1024
    return 48 * 1024 * 1024


def _pick_tiles(T, kind):
    """Return (query tile, padded sequence length), generation aware."""
    prefs = (256, 128) if "v7" in kind else (512, 256, 128)
    for t in prefs:
        if T % t == 0:
            return t, T
    if T <= prefs[-1]:
        return T, T                          # tiny sequence: one tile, no padding
    tq = prefs[-1]
    return tq, pl.cdiv(T, tq) * tq           # pad; keys masked in-kernel


def _const_spec(shape, single_buffer):
    """BlockSpec for an operand whose block index never changes (weights/biases).
    With single_buffer=True keep one VMEM buffer instead of Pallas' default
    double buffering (halves resident weight VMEM; decisive on v7x)."""
    idx = lambda b, t: (0,) * len(shape)
    if single_buffer:
        return pl.BlockSpec(shape, idx, pipeline_mode=pl.Buffered(1))
    return pl.BlockSpec(shape, idx)


def _layernorm(x, w, b, eps=1e-5):
    # Two-pass LN: (x - mu) is needed for the output anyway, so this costs the
    # same as E[x^2] - mu^2 but avoids catastrophic cancellation.
    mu = jnp.mean(x, axis=-1, keepdims=True)
    xc = x - mu
    var = jnp.mean(xc * xc, axis=-1, keepdims=True)
    return xc * jax.lax.rsqrt(var + eps) * w + b


# ----------------------------- kernels -------------------------------------


def _ln_qkv_kernel(x_ref, ln1w_ref, ln1b_ref, qkvw_ref, qkvb_ref,
                   q_ref, k_ref, v_ref, *, n_embd, attn_scale):
    x = x_ref[0]                                               # (Tq, C) f32
    h = _layernorm(x, ln1w_ref[0], ln1b_ref[0])
    qkv = jnp.dot(h.astype(jnp.bfloat16), qkvw_ref[...],      # bf16 x bf16, f32 acc
                  preferred_element_type=jnp.float32) + qkvb_ref[0]
    C = n_embd
    # Lane-dense, token-major q/k/v outputs (no wrapper-side HBM transposes);
    # the attention scale is folded into q here (cheaper than scaling scores).
    q_ref[0] = (qkv[:, :C] * attn_scale).astype(q_ref.dtype)
    k_ref[0] = qkv[:, C:2 * C].astype(k_ref.dtype)
    v_ref[0] = qkv[:, 2 * C:].astype(v_ref.dtype)


def _attn_mlp_kernel(x_ref, q_ref, k_ref, v_ref,
                     projw_ref, projb_ref, ln2w_ref, ln2b_ref,
                     fc1w_ref, fc1b_ref, fc2w_ref, fc2b_ref,
                     o_ref, y_scr, *, n_heads, head_dim, seq_len, bf16_elemwise):
    x = x_ref[0]                                               # (Tq, C)   f32
    q = q_ref[0]                                               # (Tq, C)   bf16 (pre-scaled)
    k = k_ref[0]                                               # (Tk, C)   bf16
    v = v_ref[0]                                               # (Tk, C)   bf16
    t_keys = k.shape[0]

    kmask = None
    if seq_len < t_keys:                                       # static: only when padded
        kmask = jax.lax.broadcasted_iota(jnp.int32, (1, t_keys), 1) < seq_len

    # ---- attention: one head at a time so only one (Tq, Tk) score block is
    # live; per-head (Tq, hd) results land token-major in a bf16 VMEM scratch.
    # TODO(synk): flash-style KV tiling (online softmax) for very long T.
    for h in range(n_heads):
        lo = h * head_dim
        qh = q[:, lo:lo + head_dim]                            # (Tq, hd) bf16
        kh = k[:, lo:lo + head_dim]                            # (Tk, hd) bf16
        vh = v[:, lo:lo + head_dim]                            # (Tk, hd) bf16
        s = jax.lax.dot_general(qh, kh, (((1,), (1,)), ((), ())),
                                preferred_element_type=jnp.float32)  # (Tq, Tk) f32
        if kmask is not None:
            s = jnp.where(kmask, s, -1e30)
        smax = jnp.max(s, axis=-1, keepdims=True)              # fp32 row max
        if bf16_elemwise:
            # bf16 VPU/EUP softmax (v6e/v7x); denominator kept in fp32.
            p = jnp.exp((s - smax).astype(jnp.bfloat16))
            denom = jnp.sum(p, axis=-1, keepdims=True, dtype=jnp.float32)
            pn = p * pl.reciprocal(denom, approx=True).astype(jnp.bfloat16)
        else:
            p = jnp.exp(s - smax)
            denom = jnp.sum(p, axis=-1, keepdims=True)
            pn = (p * pl.reciprocal(denom, approx=True)).astype(jnp.bfloat16)
        y_scr[:, lo:lo + head_dim] = jnp.dot(
            pn, vh, preferred_element_type=jnp.float32).astype(y_scr.dtype)

    # ---- single token-major output projection (K = C fills the MXU) + residual
    attn = jnp.dot(y_scr[...], projw_ref[...],
                   preferred_element_type=jnp.float32) + projb_ref[0]
    x = x + attn

    # ---- MLP branch + residual ----
    h2 = _layernorm(x, ln2w_ref[0], ln2b_ref[0])
    h2 = jnp.dot(h2.astype(jnp.bfloat16), fc1w_ref[...],
                 preferred_element_type=jnp.float32) + fc1b_ref[0]
    if bf16_elemwise:
        h2 = h2.astype(jnp.bfloat16)                           # bf16 GELU chain
    # exact (erf-based) GELU, matching F.gelu default
    h2 = 0.5 * h2 * (1.0 + jax.lax.erf(h2 * (1.0 / math.sqrt(2.0))))
    h2 = jnp.dot(h2.astype(jnp.bfloat16), fc2w_ref[...],
                 preferred_element_type=jnp.float32) + fc2b_ref[0]

    o_ref[0] = (x + h2).astype(o_ref.dtype)


# ----------------------------- wrapper --------------------------------------


@functools.partial(jax.jit, static_argnames=("n_heads", "fast"))
def attention_block(x, params, *, n_heads, fast=True):
    B, T, C = x.shape
    head_dim = C // n_heads
    kind = _device_kind()
    Tq, Tpad = _pick_tiles(T, kind)
    nT = Tpad // Tq
    bf16 = jnp.bfloat16

    x_p = jnp.pad(x, ((0, 0), (0, Tpad - T), (0, 0))) if Tpad != T else x

    qkv_w = params["qkv_w"].astype(bf16)                       # (C, 3C)
    proj_w = params["proj_w"].astype(bf16)                     # (C, C)
    fc1_w = params["fc1_w"].astype(bf16)                       # (C, 4C)
    fc2_w = params["fc2_w"].astype(bf16)                       # (4C, C)

    cparams = pltpu.CompilerParams(
        dimension_semantics=("parallel", "parallel"),
        vmem_limit_bytes=_vmem_limit_bytes(kind))

    # ---- stage 1: LN1 + fused QKV projection -> token-major bf16 q/k/v ----
    stage1 = functools.partial(_ln_qkv_kernel, n_embd=C,
                               attn_scale=1.0 / math.sqrt(head_dim))
    q, k, v = pl.pallas_call(
        stage1,
        out_shape=(jax.ShapeDtypeStruct((B, Tpad, C), bf16),
                   jax.ShapeDtypeStruct((B, Tpad, C), bf16),
                   jax.ShapeDtypeStruct((B, Tpad, C), bf16)),
        grid_spec=pltpu.PrefetchScalarGridSpec(
            num_scalar_prefetch=0,
            grid=(B, nT),
            in_specs=[
                pl.BlockSpec((1, Tq, C), lambda b, t: (b, t, 0)),   # x tile
                _const_spec((1, C), fast),                          # ln1_w
                _const_spec((1, C), fast),                          # ln1_b
                _const_spec((C, 3 * C), fast),                      # qkv_w
                _const_spec((1, 3 * C), fast),                      # qkv_b
            ],
            out_specs=[
                pl.BlockSpec((1, Tq, C), lambda b, t: (b, t, 0)),   # q (scaled)
                pl.BlockSpec((1, Tq, C), lambda b, t: (b, t, 0)),   # k
                pl.BlockSpec((1, Tq, C), lambda b, t: (b, t, 0)),   # v
            ]),
        compiler_params=cparams,
    )(x_p, params["ln1_w"], params["ln1_b"], qkv_w, params["qkv_b"])

    # ---- stage 2: per-head attention + proj + residual + LN2 + MLP + residual
    stage2 = functools.partial(_attn_mlp_kernel, n_heads=n_heads,
                               head_dim=head_dim, seq_len=T, bf16_elemwise=fast)
    out = pl.pallas_call(
        stage2,
        out_shape=jax.ShapeDtypeStruct((B, Tpad, C), x.dtype),
        grid_spec=pltpu.PrefetchScalarGridSpec(
            num_scalar_prefetch=0,
            grid=(B, nT),
            in_specs=[
                pl.BlockSpec((1, Tq, C), lambda b, t: (b, t, 0)),    # x tile
                pl.BlockSpec((1, Tq, C), lambda b, t: (b, t, 0)),    # q tile
                pl.BlockSpec((1, Tpad, C), lambda b, t: (b, 0, 0)),  # k full seq
                pl.BlockSpec((1, Tpad, C), lambda b, t: (b, 0, 0)),  # v full seq
                _const_spec((C, C), fast),                           # proj_w
                _const_spec((1, C), fast),                           # proj_b
                _const_spec((1, C), fast),                           # ln2_w
                _const_spec((1, C), fast),                           # ln2_b
                _const_spec((C, 4 * C), fast),                       # fc1_w
                _const_spec((1, 4 * C), fast),                       # fc1_b
                _const_spec((4 * C, C), fast),                       # fc2_w
                _const_spec((1, C), fast),                           # fc2_b
            ],
            out_specs=pl.BlockSpec((1, Tq, C), lambda b, t: (b, t, 0)),
            scratch_shapes=[pltpu.VMEM((Tq, C), bf16)]),             # token-major y
        compiler_params=cparams,
    )(x_p, q, k, v,
      proj_w, params["proj_b"], params["ln2_w"], params["ln2_b"],
      fc1_w, params["fc1_b"], fc2_w, params["fc2_b"])

    if Tpad != T:
        out = out[:, :T, :]
    return out


# ----------------------------- params / reference ---------------------------


def init_params(key, n_embd):
    """Deterministic synthetic parameters (Linear weights stored as (in, out))."""
    ks = jax.random.split(key, 8)
    s = 0.02
    return {
        "ln1_w": jnp.ones((1, n_embd), jnp.float32),
        "ln1_b": jnp.zeros((1, n_embd), jnp.float32),
        "qkv_w": s * jax.random.normal(ks[0], (n_embd, 3 * n_embd), jnp.float32),
        "qkv_b": s * jax.random.normal(ks[1], (1, 3 * n_embd), jnp.float32),
        "proj_w": s * jax.random.normal(ks[2], (n_embd, n_embd), jnp.float32),
        "proj_b": s * jax.random.normal(ks[3], (1, n_embd), jnp.float32),
        "ln2_w": jnp.ones((1, n_embd), jnp.float32),
        "ln2_b": jnp.zeros((1, n_embd), jnp.float32),
        "fc1_w": s * jax.random.normal(ks[4], (n_embd, 4 * n_embd), jnp.float32),
        "fc1_b": s * jax.random.normal(ks[5], (1, 4 * n_embd), jnp.float32),
        "fc2_w": s * jax.random.normal(ks[6], (4 * n_embd, n_embd), jnp.float32),
        "fc2_b": s * jax.random.normal(ks[7], (1, n_embd), jnp.float32),
    }


def reference_block(x, p, n_heads):
    """Pure-JAX fp32 reference of the PyTorch forward (dropout = identity)."""
    B, T, C = x.shape
    hd = C // n_heads

    def ln(v, w, b):
        mu = jnp.mean(v, axis=-1, keepdims=True)
        var = jnp.mean((v - mu) ** 2, axis=-1, keepdims=True)
        return (v - mu) / jnp.sqrt(var + 1e-5) * w + b

    h = ln(x, p["ln1_w"][0], p["ln1_b"][0])
    qkv = h @ p["qkv_w"] + p["qkv_b"][0]
    q, k, v = jnp.split(qkv, 3, axis=-1)
    q = q.reshape(B, T, n_heads, hd).transpose(0, 2, 1, 3)
    k = k.reshape(B, T, n_heads, hd).transpose(0, 2, 1, 3)
    v = v.reshape(B, T, n_heads, hd).transpose(0, 2, 1, 3)
    att = jax.nn.softmax((q @ k.transpose(0, 1, 3, 2)) / math.sqrt(hd), axis=-1)
    y = (att @ v).transpose(0, 2, 1, 3).reshape(B, T, C)
    y = y @ p["proj_w"] + p["proj_b"][0]
    x = x + y
    h = ln(x, p["ln2_w"][0], p["ln2_b"][0])
    h = h @ p["fc1_w"] + p["fc1_b"][0]
    h = 0.5 * h * (1.0 + jax.lax.erf(h / math.sqrt(2.0)))
    h = h @ p["fc2_w"] + p["fc2_b"][0]
    return x + h


if __name__ == "__main__":
    B, T, C, n_heads = 2, 8, 32, 4

    key = jax.random.PRNGKey(0)
    kx, kp = jax.random.split(key)
    x = jax.random.normal(kx, (B, T, C), jnp.float32)
    params = init_params(kp, C)

    try:
        out = jax.block_until_ready(
            attention_block(x, params, n_heads=n_heads, fast=True))
    except Exception:
        # Conservative fallback (double-buffered weights, fp32 softmax/GELU
        # elementwise) in case this Pallas build rejects pl.Buffered(1) or
        # bf16 transcendentals.
        out = jax.block_until_ready(
            attention_block(x, params, n_heads=n_heads, fast=False))

    ref = reference_block(x, params, n_heads)
    assert out.shape == (B, T, C)
    max_err = float(jnp.max(jnp.abs(out - ref)))
    assert jnp.allclose(out, ref, rtol=2e-2, atol=2e-2), f"mismatch vs reference: {max_err}"

    print("KERNEL_OK")
</pallas_src>

<mosaic_0001>
module attributes {stable_mosaic.version = 11 : i64} {
  func.func @_attn_mlp_kernel(%arg0: i32, %arg1: i32, %arg2: memref<1x8x32xf32, #tpu.memory_space<vmem>>, %arg3: memref<1x8x32xbf16, #tpu.memory_space<vmem>>, %arg4: memref<1x8x32xbf16, #tpu.memory_space<vmem>>, %arg5: memref<1x8x32xbf16, #tpu.memory_space<vmem>>, %arg6: memref<32x32xbf16, #tpu.memory_space<vmem>>, %arg7: memref<1x32xf32, #tpu.memory_space<vmem>>, %arg8: memref<1x32xf32, #tpu.memory_space<vmem>>, %arg9: memref<1x32xf32, #tpu.memory_space<vmem>>, %arg10: memref<32x128xbf16, #tpu.memory_space<vmem>>, %arg11: memref<1x128xf32, #tpu.memory_space<vmem>>, %arg12: memref<128x32xbf16, #tpu.memory_space<vmem>>, %arg13: memref<1x32xf32, #tpu.memory_space<vmem>>, %arg14: memref<1x8x32xf32, #tpu.memory_space<vmem>>, %arg15: memref<8x32xbf16, #tpu.memory_space<vmem>>) attributes {dimension_semantics = [#tpu.dimension_semantics<parallel>, #tpu.dimension_semantics<parallel>], iteration_bounds = array<i64: 2, 1>, scalar_prefetch = 0 : i64, scratch_operands = 1 : i64, tpu.core_type = #tpu.core_type<tc>, window_params = [{transform_indices = @transform_0, window_bounds = array<i64: 1, 8, 32>}, {transform_indices = @transform_1, window_bounds = array<i64: 1, 8, 32>}, {transform_indices = @transform_2, window_bounds = array<i64: 1, 8, 32>}, {transform_indices = @transform_3, window_bounds = array<i64: 1, 8, 32>}, {pipeline_mode = #tpu.pipeline_mode<synchronous>, transform_indices = @transform_4, window_bounds = array<i64: 32, 32>}, {pipeline_mode = #tpu.pipeline_mode<synchronous>, transform_indices = @transform_5, window_bounds = array<i64: 1, 32>}, {pipeline_mode = #tpu.pipeline_mode<synchronous>, transform_indices = @transform_6, window_bounds = array<i64: 1, 32>}, {pipeline_mode = #tpu.pipeline_mode<synchronous>, transform_indices = @transform_7, window_bounds = array<i64: 1, 32>}, {pipeline_mode = #tpu.pipeline_mode<synchronous>, transform_indices = @transform_8, window_bounds = array<i64: 32, 128>}, {pipeline_mode = #tpu.pipeline_mode<synchronous>, transform_indices = @transform_9, window_bounds = array<i64: 1, 128>}, {pipeline_mode = #tpu.pipeline_mode<synchronous>, transform_indices = @transform_10, window_bounds = array<i64: 128, 32>}, {pipeline_mode = #tpu.pipeline_mode<synchronous>, transform_indices = @transform_11, window_bounds = array<i64: 1, 32>}, {transform_indices = @transform_12, window_bounds = array<i64: 1, 8, 32>}]} {
    %c0 = arith.constant 0 : index
    %c0_0 = arith.constant 0 : index
    %c0_1 = arith.constant 0 : index
    %0 = vector.load %arg2[%c0, %c0_0, %c0_1] : memref<1x8x32xf32, #tpu.memory_space<vmem>>, vector<1x8x32xf32>
    %1 = vector.shape_cast %0 : vector<1x8x32xf32> to vector<8x32xf32>
    %c0_2 = arith.constant 0 : index
    %c0_3 = arith.constant 0 : index
    %c0_4 = arith.constant 0 : index
    %2 = vector.load %arg3[%c0_2, %c0_3, %c0_4] : memref<1x8x32xbf16, #tpu.memory_space<vmem>>, vector<1x8x32xbf16>
    %3 = vector.shape_cast %2 : vector<1x8x32xbf16> to vector<8x32xbf16>
    %c0_5 = arith.constant 0 : index
    %c0_6 = arith.constant 0 : index
    %c0_7 = arith.constant 0 : index
    %4 = vector.load %arg4[%c0_5, %c0_6, %c0_7] : memref<1x8x32xbf16, #tpu.memory_space<vmem>>, vector<1x8x32xbf16>
    %5 = vector.shape_cast %4 : vector<1x8x32xbf16> to vector<8x32xbf16>
    %c0_8 = arith.constant 0 : index
    %c0_9 = arith.constant 0 : index
    %c0_10 = arith.constant 0 : index
    %6 = vector.load %arg5[%c0_8, %c0_9, %c0_10] : memref<1x8x32xbf16, #tpu.memory_space<vmem>>, vector<1x8x32xbf16>
    %7 = vector.shape_cast %6 : vector<1x8x32xbf16> to vector<8x32xbf16>
    %8 = vector.extract_strided_slice %3 {offsets = [0, 0], sizes = [8, 8], strides = [1, 1]} : vector<8x32xbf16> to vector<8x8xbf16>
    %9 = vector.extract_strided_slice %5 {offsets = [0, 0], sizes = [8, 8], strides = [1, 1]} : vector<8x32xbf16> to vector<8x8xbf16>
    %10 = vector.extract_strided_slice %7 {offsets = [0, 0], sizes = [8, 8], strides = [1, 1]} : vector<8x32xbf16> to vector<8x8xbf16>
    %cst = arith.constant dense<0.000000e+00> : vector<8x8xf32>
    %11 = tpu.matmul %8, %9, %cst {dimension_numbers = #tpu.dot_dimension_numbers<[1], [1], [0], [0], [0, 0, 1, 0], [], []>} : vector<8x8xbf16>, vector<8x8xbf16>, vector<8x8xf32> -> vector<8x8xf32>
    %cst_11 = arith.constant dense<0xFF800000> : vector<8xf32>
    %12 = vector.multi_reduction <maximumf>, %11, %cst_11 [1] : vector<8x8xf32> to vector<8xf32>
    %13 = vector.shape_cast %12 : vector<8xf32> to vector<8x1xf32>
    %14 = vector.broadcast %13 : vector<8x1xf32> to vector<8x8xf32>
    %15 = arith.subf %11, %14 : vector<8x8xf32>
    %16 = arith.truncf %15 : vector<8x8xf32> to vector<8x8xbf16>
    %17 = math.exp %16 : vector<8x8xbf16>
    %18 = arith.extf %17 : vector<8x8xbf16> to vector<8x8xf32>
    %cst_12 = arith.constant dense<0.000000e+00> : vector<8xf32>
    %19 = vector.multi_reduction <add>, %18, %cst_12 [1] : vector<8x8xf32> to vector<8xf32>
    %20 = vector.shape_cast %19 : vector<8xf32> to vector<8x1xf32>
    %21 = tpu.reciprocal %20 {approx = true} : vector<8x1xf32> -> vector<8x1xf32>
    %22 = arith.truncf %21 : vector<8x1xf32> to vector<8x1xbf16>
    %23 = vector.broadcast %22 : vector<8x1xbf16> to vector<8x8xbf16>
    %24 = arith.mulf %17, %23 : vector<8x8xbf16>
    %cst_13 = arith.constant dense<0.000000e+00> : vector<8x8xf32>
    %25 = tpu.matmul %24, %10, %cst_13 {dimension_numbers = #tpu.dot_dimension_numbers<[1], [0], [0], [1], [0, 0, 1, 1], [], []>} : vector<8x8xbf16>, vector<8x8xbf16>, vector<8x8xf32> -> vector<8x8xf32>
    %26 = arith.truncf %25 : vector<8x8xf32> to vector<8x8xbf16>
    %c0_14 = arith.constant 0 : index
    %c0_15 = arith.constant 0 : index
    %27 = vector.load %arg15[%c0_14, %c0_15] : memref<8x32xbf16, #tpu.memory_space<vmem>>, vector<8x8xbf16>
    tpu.vector_store %arg15[%c0_14, %c0_15], %26 {strides = array<i32>} : memref<8x32xbf16, #tpu.memory_space<vmem>>, vector<8x8xbf16>,
    %28 = vector.extract_strided_slice %3 {offsets = [0, 8], sizes = [8, 8], strides = [1, 1]} : vector<8x32xbf16> to vector<8x8xbf16>
    %29 = vector.extract_strided_slice %5 {offsets = [0, 8], sizes = [8, 8], strides = [1, 1]} : vector<8x32xbf16> to vector<8x8xbf16>
    %30 = vector.extract_strided_slice %7 {offsets = [0, 8], sizes = [8, 8], strides = [1, 1]} : vector<8x32xbf16> to vector<8x8xbf16>
    %cst_16 = arith.constant dense<0.000000e+00> : vector<8x8xf32>
    %31 = tpu.matmul %28, %29, %cst_16 {dimension_numbers = #tpu.dot_dimension_numbers<[1], [1], [0], [0], [0, 0, 1, 0], [], []>} : vector<8x8xbf16>, vector<8x8xbf16>, vector<8x8xf32> -> vector<8x8xf32>
    %cst_17 = arith.constant dense<0xFF800000> : vector<8xf32>
    %32 = vector.multi_reduction <maximumf>, %31, %cst_17 [1] : vector<8x8xf32> to vector<8xf32>
    %33 = vector.shape_cast %32 : vector<8xf32> to vector<8x1xf32>
    %34 = vector.broadcast %33 : vector<8x1xf32> to vector<8x8xf32>
    %35 = arith.subf %31, %34 : vector<8x8xf32>
    %36 = arith.truncf %35 : vector<8x8xf32> to vector<8x8xbf16>
    %37 = math.exp %36 : vector<8x8xbf16>
    %38 = arith.extf %37 : vector<8x8xbf16> to vector<8x8xf32>
    %cst_18 = arith.constant dense<0.000000e+00> : vector<8xf32>
    %39 = vector.multi_reduction <add>, %38, %cst_18 [1] : vector<8x8xf32> to vector<8xf32>
    %40 = vector.shape_cast %39 : vector<8xf32> to vector<8x1xf32>
    %41 = tpu.reciprocal %40 {approx = true} : vector<8x1xf32> -> vector<8x1xf32>
    %42 = arith.truncf %41 : vector<8x1xf32> to vector<8x1xbf16>
    %43 = vector.broadcast %42 : vector<8x1xbf16> to vector<8x8xbf16>
    %44 = arith.mulf %37, %43 : vector<8x8xbf16>
    %cst_19 = arith.constant dense<0.000000e+00> : vector<8x8xf32>
    %45 = tpu.matmul %44, %30, %cst_19 {dimension_numbers = #tpu.dot_dimension_numbers<[1], [0], [0], [1], [0, 0, 1, 1], [], []>} : vector<8x8xbf16>, vector<8x8xbf16>, vector<8x8xf32> -> vector<8x8xf32>
    %46 = arith.truncf %45 : vector<8x8xf32> to vector<8x8xbf16>
    %c0_20 = arith.constant 0 : index
    %c8 = arith.constant 8 : index
    %47 = vector.load %arg15[%c0_20, %c8] : memref<8x32xbf16, #tpu.memory_space<vmem>>, vector<8x8xbf16>
    tpu.vector_store %arg15[%c0_20, %c8], %46 {strides = array<i32>} : memref<8x32xbf16, #tpu.memory_space<vmem>>, vector<8x8xbf16>,
    %48 = vector.extract_strided_slice %3 {offsets = [0, 16], sizes = [8, 8], strides = [1, 1]} : vector<8x32xbf16> to vector<8x8xbf16>
    %49 = vector.extract_strided_slice %5 {offsets = [0, 16], sizes = [8, 8], strides = [1, 1]} : vector<8x32xbf16> to vector<8x8xbf16>
    %50 = vector.extract_strided_slice %7 {offsets = [0, 16], sizes = [8, 8], strides = [1, 1]} : vector<8x32xbf16> to vector<8x8xbf16>
    %cst_21 = arith.constant dense<0.000000e+00> : vector<8x8xf32>
    %51 = tpu.matmul %48, %49, %cst_21 {dimension_numbers = #tpu.dot_dimension_numbers<[1], [1], [0], [0], [0, 0, 1, 0], [], []>} : vector<8x8xbf16>, vector<8x8xbf16>, vector<8x8xf32> -> vector<8x8xf32>
    %cst_22 = arith.constant dense<0xFF800000> : vector<8xf32>
    %52 = vector.multi_reduction <maximumf>, %51, %cst_22 [1] : vector<8x8xf32> to vector<8xf32>
    %53 = vector.shape_cast %52 : vector<8xf32> to vector<8x1xf32>
    %54 = vector.broadcast %53 : vector<8x1xf32> to vector<8x8xf32>
    %55 = arith.subf %51, %54 : vector<8x8xf32>
    %56 = arith.truncf %55 : vector<8x8xf32> to vector<8x8xbf16>
    %57 = math.exp %56 : vector<8x8xbf16>
    %58 = arith.extf %57 : vector<8x8xbf16> to vector<8x8xf32>
    %cst_23 = arith.constant dense<0.000000e+00> : vector<8xf32>
    %59 = vector.multi_reduction <add>, %58, %cst_23 [1] : vector<8x8xf32> to vector<8xf32>
    %60 = vector.shape_cast %59 : vector<8xf32> to vector<8x1xf32>
    %61 = tpu.reciprocal %60 {approx = true} : vector<8x1xf32> -> vector<8x1xf32>
    %62 = arith.truncf %61 : vector<8x1xf32> to vector<8x1xbf16>
    %63 = vector.broadcast %62 : vector<8x1xbf16> to vector<8x8xbf16>
    %64 = arith.mulf %57, %63 : vector<8x8xbf16>
    %cst_24 = arith.constant dense<0.000000e+00> : vector<8x8xf32>
    %65 = tpu.matmul %64, %50, %cst_24 {dimension_numbers = #tpu.dot_dimension_numbers<[1], [0], [0], [1], [0, 0, 1, 1], [], []>} : vector<8x8xbf16>, vector<8x8xbf16>, vector<8x8xf32> -> vector<8x8xf32>
    %66 = arith.truncf %65 : vector<8x8xf32> to vector<8x8xbf16>
    %c0_25 = arith.constant 0 : index
    %c16 = arith.constant 16 : index
    %67 = vector.load %arg15[%c0_25, %c16] : memref<8x32xbf16, #tpu.memory_space<vmem>>, vector<8x8xbf16>
    tpu.vector_store %arg15[%c0_25, %c16], %66 {strides = array<i32>} : memref<8x32xbf16, #tpu.memory_space<vmem>>, vector<8x8xbf16>,
    %68 = vector.extract_strided_slice %3 {offsets = [0, 24], sizes = [8, 8], strides = [1, 1]} : vector<8x32xbf16> to vector<8x8xbf16>
    %69 = vector.extract_strided_slice %5 {offsets = [0, 24], sizes = [8, 8], strides = [1, 1]} : vector<8x32xbf16> to vector<8x8xbf16>
    %70 = vector.extract_strided_slice %7 {offsets = [0, 24], sizes = [8, 8], strides = [1, 1]} : vector<8x32xbf16> to vector<8x8xbf16>
    %cst_26 = arith.constant dense<0.000000e+00> : vector<8x8xf32>
    %71 = tpu.matmul %68, %69, %cst_26 {dimension_numbers = #tpu.dot_dimension_numbers<[1], [1], [0], [0], [0, 0, 1, 0], [], []>} : vector<8x8xbf16>, vector<8x8xbf16>, vector<8x8xf32> -> vector<8x8xf32>
    %cst_27 = arith.constant dense<0xFF800000> : vector<8xf32>
    %72 = vector.multi_reduction <maximumf>, %71, %cst_27 [1] : vector<8x8xf32> to vector<8xf32>
    %73 = vector.shape_cast %72 : vector<8xf32> to vector<8x1xf32>
    %74 = vector.broadcast %73 : vector<8x1xf32> to vector<8x8xf32>
    %75 = arith.subf %71, %74 : vector<8x8xf32>
    %76 = arith.truncf %75 : vector<8x8xf32> to vector<8x8xbf16>
    %77 = math.exp %76 : vector<8x8xbf16>
    %78 = arith.extf %77 : vector<8x8xbf16> to vector<8x8xf32>
    %cst_28 = arith.constant dense<0.000000e+00> : vector<8xf32>
    %79 = vector.multi_reduction <add>, %78, %cst_28 [1] : vector<8x8xf32> to vector<8xf32>
    %80 = vector.shape_cast %79 : vector<8xf32> to vector<8x1xf32>
    %81 = tpu.reciprocal %80 {approx = true} : vector<8x1xf32> -> vector<8x1xf32>
    %82 = arith.truncf %81 : vector<8x1xf32> to vector<8x1xbf16>
    %83 = vector.broadcast %82 : vector<8x1xbf16> to vector<8x8xbf16>
    %84 = arith.mulf %77, %83 : vector<8x8xbf16>
    %cst_29 = arith.constant dense<0.000000e+00> : vector<8x8xf32>
    %85 = tpu.matmul %84, %70, %cst_29 {dimension_numbers = #tpu.dot_dimension_numbers<[1], [0], [0], [1], [0, 0, 1, 1], [], []>} : vector<8x8xbf16>, vector<8x8xbf16>, vector<8x8xf32> -> vector<8x8xf32>
    %86 = arith.truncf %85 : vector<8x8xf32> to vector<8x8xbf16>
    %c0_30 = arith.constant 0 : index
    %c24 = arith.constant 24 : index
    %87 = vector.load %arg15[%c0_30, %c24] : memref<8x32xbf16, #tpu.memory_space<vmem>>, vector<8x8xbf16>
    tpu.vector_store %arg15[%c0_30, %c24], %86 {strides = array<i32>} : memref<8x32xbf16, #tpu.memory_space<vmem>>, vector<8x8xbf16>,
    %c0_31 = arith.constant 0 : index
    %c0_32 = arith.constant 0 : index
    %88 = vector.load %arg15[%c0_31, %c0_32] : memref<8x32xbf16, #tpu.memory_space<vmem>>, vector<8x32xbf16>
    %c0_33 = arith.constant 0 : index
    %c0_34 = arith.constant 0 : index
    %89 = vector.load %arg6[%c0_33, %c0_34] : memref<32x32xbf16, #tpu.memory_space<vmem>>, vector<32x32xbf16>
    %cst_35 = arith.constant dense<0.000000e+00> : vector<8x32xf32>
    %90 = tpu.matmul %88, %89, %cst_35 {dimension_numbers = #tpu.dot_dimension_numbers<[1], [0], [0], [1], [0, 0, 1, 1], [], []>} : vector<8x32xbf16>, vector<32x32xbf16>, vector<8x32xf32> -> vector<8x32xf32>
    %c0_36 = arith.constant 0 : index
    %c0_37 = arith.constant 0 : index
    %91 = vector.load %arg7[%c0_36, %c0_37] : memref<1x32xf32, #tpu.memory_space<vmem>>, vector<1x32xf32>
    %92 = vector.shape_cast %91 : vector<1x32xf32> to vector<32xf32>
    %93 = vector.shape_cast %92 : vector<32xf32> to vector<1x32xf32>
    %94 = vector.broadcast %93 : vector<1x32xf32> to vector<8x32xf32>
    %95 = arith.addf %90, %94 : vector<8x32xf32>
    %96 = arith.addf %1, %95 : vector<8x32xf32>
    %c0_38 = arith.constant 0 : index
    %c0_39 = arith.constant 0 : index
    %97 = vector.load %arg8[%c0_38, %c0_39] : memref<1x32xf32, #tpu.memory_space<vmem>>, vector<1x32xf32>
    %98 = vector.shape_cast %97 : vector<1x32xf32> to vector<32xf32>
    %c0_40 = arith.constant 0 : index
    %c0_41 = arith.constant 0 : index
    %99 = vector.load %arg9[%c0_40, %c0_41] : memref<1x32xf32, #tpu.memory_space<vmem>>, vector<1x32xf32>
    %100 = vector.shape_cast %99 : vector<1x32xf32> to vector<32xf32>
    %cst_42 = arith.constant dense<0.000000e+00> : vector<8xf32>
    %101 = vector.multi_reduction <add>, %96, %cst_42 [1] : vector<8x32xf32> to vector<8xf32>
    %102 = vector.shape_cast %101 : vector<8xf32> to vector<8x1xf32>
    %cst_43 = arith.constant 3.200000e+01 : f32
    %103 = vector.broadcast %cst_43 : f32 to vector<8x1xf32>
    %104 = arith.divf %102, %103 : vector<8x1xf32>
    %105 = vector.broadcast %104 : vector<8x1xf32> to vector<8x32xf32>
    %106 = arith.subf %96, %105 : vector<8x32xf32>
    %107 = arith.mulf %106, %106 : vector<8x32xf32>
    %cst_44 = arith.constant dense<0.000000e+00> : vector<8xf32>
    %108 = vector.multi_reduction <add>, %107, %cst_44 [1] : vector<8x32xf32> to vector<8xf32>
    %109 = vector.shape_cast %108 : vector<8xf32> to vector<8x1xf32>
    %cst_45 = arith.constant 3.200000e+01 : f32
    %110 = vector.broadcast %cst_45 : f32 to vector<8x1xf32>
    %111 = arith.divf %109, %110 : vector<8x1xf32>
    %cst_46 = arith.constant 9.99999974E-6 : f32
    %112 = vector.broadcast %cst_46 : f32 to vector<8x1xf32>
    %113 = arith.addf %111, %112 : vector<8x1xf32>
    %114 = math.rsqrt %113 : vector<8x1xf32>
    %115 = vector.broadcast %114 : vector<8x1xf32> to vector<8x32xf32>
    %116 = arith.mulf %106, %115 : vector<8x32xf32>
    %117 = vector.shape_cast %98 : vector<32xf32> to vector<1x32xf32>
    %118 = vector.broadcast %117 : vector<1x32xf32> to vector<8x32xf32>
    %119 = arith.mulf %116, %118 : vector<8x32xf32>
    %120 = vector.shape_cast %100 : vector<32xf32> to vector<1x32xf32>
    %121 = vector.broadcast %120 : vector<1x32xf32> to vector<8x32xf32>
    %122 = arith.addf %119, %121 : vector<8x32xf32>
    %123 = arith.truncf %122 : vector<8x32xf32> to vector<8x32xbf16>
    %c0_47 = arith.constant 0 : index
    %c0_48 = arith.constant 0 : index
    %124 = vector.load %arg10[%c0_47, %c0_48] : memref<32x128xbf16, #tpu.memory_space<vmem>>, vector<32x128xbf16>
    %cst_49 = arith.constant dense<0.000000e+00> : vector<8x128xf32>
    %125 = tpu.matmul %123, %124, %cst_49 {dimension_numbers = #tpu.dot_dimension_numbers<[1], [0], [0], [1], [0, 0, 1, 1], [], []>} : vector<8x32xbf16>, vector<32x128xbf16>, vector<8x128xf32> -> vector<8x128xf32>
    %c0_50 = arith.constant 0 : index
    %c0_51 = arith.constant 0 : index
    %126 = vector.load %arg11[%c0_50, %c0_51] : memref<1x128xf32, #tpu.memory_space<vmem>>, vector<1x128xf32>
    %127 = vector.shape_cast %126 : vector<1x128xf32> to vector<128xf32>
    %128 = vector.shape_cast %127 : vector<128xf32> to vector<1x128xf32>
    %129 = vector.broadcast %128 : vector<1x128xf32> to vector<8x128xf32>
    %130 = arith.addf %125, %129 : vector<8x128xf32>
    %131 = arith.truncf %130 : vector<8x128xf32> to vector<8x128xbf16>
    %cst_52 = arith.constant 5.000000e-01 : bf16
    %132 = vector.broadcast %cst_52 : bf16 to vector<8x128xbf16>
    %133 = arith.mulf %132, %131 : vector<8x128xbf16>
    %cst_53 = arith.constant 7.070310e-01 : bf16
    %134 = vector.broadcast %cst_53 : bf16 to vector<8x128xbf16>
    %135 = arith.mulf %131, %134 : vector<8x128xbf16>
    %136 = math.erf %135 : vector<8x128xbf16>
    %cst_54 = arith.constant 1.000000e+00 : bf16
    %137 = vector.broadcast %cst_54 : bf16 to vector<8x128xbf16>
    %138 = arith.addf %137, %136 : vector<8x128xbf16>
    %139 = arith.mulf %133, %138 : vector<8x128xbf16>
    %c0_55 = arith.constant 0 : index
    %c0_56 = arith.constant 0 : index
    %140 = vector.load %arg12[%c0_55, %c0_56] : memref<128x32xbf16, #tpu.memory_space<vmem>>, vector<128x32xbf16>
    %cst_57 = arith.constant dense<0.000000e+00> : vector<8x32xf32>
    %141 = tpu.matmul %139, %140, %cst_57 {dimension_numbers = #tpu.dot_dimension_numbers<[1], [0], [0], [1], [0, 0, 1, 1], [], []>} : vector<8x128xbf16>, vector<128x32xbf16>, vector<8x32xf32> -> vector<8x32xf32>
    %c0_58 = arith.constant 0 : index
    %c0_59 = arith.constant 0 : index
    %142 = vector.load %arg13[%c0_58, %c0_59] : memref<1x32xf32, #tpu.memory_space<vmem>>, vector<1x32xf32>
    %143 = vector.shape_cast %142 : vector<1x32xf32> to vector<32xf32>
    %144 = vector.shape_cast %143 : vector<32xf32> to vector<1x32xf32>
    %145 = vector.broadcast %144 : vector<1x32xf32> to vector<8x32xf32>
    %146 = arith.addf %141, %145 : vector<8x32xf32>
    %147 = arith.addf %96, %146 : vector<8x32xf32>
    %c0_60 = arith.constant 0 : index
    %c0_61 = arith.constant 0 : index
    %c0_62 = arith.constant 0 : index
    %148 = vector.load %arg14[%c0_60, %c0_61, %c0_62] : memref<1x8x32xf32, #tpu.memory_space<vmem>>, vector<1x8x32xf32>
    %149 = vector.shape_cast %148 : vector<1x8x32xf32> to vector<8x32xf32>
    %150 = vector.shape_cast %147 : vector<8x32xf32> to vector<1x8x32xf32>
    tpu.vector_store %arg14[%c0_60, %c0_61, %c0_62], %150 {strides = array<i32>} : memref<1x8x32xf32, #tpu.memory_space<vmem>>, vector<1x8x32xf32>,
    return
  }
  func.func @transform_0(%arg0: i32, %arg1: i32) -> (i32, i32, i32) {
    %c0_i32 = arith.constant 0 : i32
    %c0_i32_0 = arith.constant 0 : i32
    return %arg0, %arg1, %c0_i32 : i32, i32, i32
  }
  func.func @transform_1(%arg0: i32, %arg1: i32) -> (i32, i32, i32) {
    %c0_i32 = arith.constant 0 : i32
    %c0_i32_0 = arith.constant 0 : i32
    return %arg0, %arg1, %c0_i32 : i32, i32, i32
  }
  func.func @transform_2(%arg0: i32, %arg1: i32) -> (i32, i32, i32) {
    %c0_i32 = arith.constant 0 : i32
    %c0_i32_0 = arith.constant 0 : i32
    %c0_i32_1 = arith.constant 0 : i32
    return %arg0, %c0_i32, %c0_i32_0 : i32, i32, i32
  }
  func.func @transform_3(%arg0: i32, %arg1: i32) -> (i32, i32, i32) {
    %c0_i32 = arith.constant 0 : i32
    %c0_i32_0 = arith.constant 0 : i32
    %c0_i32_1 = arith.constant 0 : i32
    return %arg0, %c0_i32, %c0_i32_0 : i32, i32, i32
  }
  func.func @transform_4(%arg0: i32, %arg1: i32) -> (i32, i32) {
    %c0_i32 = arith.constant 0 : i32
    %c0_i32_0 = arith.constant 0 : i32
    %c0_i32_1 = arith.constant 0 : i32
    return %c0_i32, %c0_i32_0 : i32, i32
  }
  func.func @transform_5(%arg0: i32, %arg1: i32) -> (i32, i32) {
    %c0_i32 = arith.constant 0 : i32
    %c0_i32_0 = arith.constant 0 : i32
    %c0_i32_1 = arith.constant 0 : i32
    return %c0_i32, %c0_i32_0 : i32, i32
  }
  func.func @transform_6(%arg0: i32, %arg1: i32) -> (i32, i32) {
    %c0_i32 = arith.constant 0 : i32
    %c0_i32_0 = arith.constant 0 : i32
    %c0_i32_1 = arith.constant 0 : i32
    return %c0_i32, %c0_i32_0 : i32, i32
  }
  func.func @transform_7(%arg0: i32, %arg1: i32) -> (i32, i32) {
    %c0_i32 = arith.constant 0 : i32
    %c0_i32_0 = arith.constant 0 : i32
    %c0_i32_1 = arith.constant 0 : i32
    return %c0_i32, %c0_i32_0 : i32, i32
  }
  func.func @transform_8(%arg0: i32, %arg1: i32) -> (i32, i32) {
    %c0_i32 = arith.constant 0 : i32
    %c0_i32_0 = arith.constant 0 : i32
    %c0_i32_1 = arith.constant 0 : i32
    return %c0_i32, %c0_i32_0 : i32, i32
  }
  func.func @transform_9(%arg0: i32, %arg1: i32) -> (i32, i32) {
    %c0_i32 = arith.constant 0 : i32
    %c0_i32_0 = arith.constant 0 : i32
    %c0_i32_1 = arith.constant 0 : i32
    return %c0_i32, %c0_i32_0 : i32, i32
  }
  func.func @transform_10(%arg0: i32, %arg1: i32) -> (i32, i32) {
    %c0_i32 = arith.constant 0 : i32
    %c0_i32_0 = arith.constant 0 : i32
    %c0_i32_1 = arith.constant 0 : i32
    return %c0_i32, %c0_i32_0 : i32, i32
  }
  func.func @transform_11(%arg0: i32, %arg1: i32) -> (i32, i32) {
    %c0_i32 = arith.constant 0 : i32
    %c0_i32_0 = arith.constant 0 : i32
    %c0_i32_1 = arith.constant 0 : i32
    return %c0_i32, %c0_i32_0 : i32, i32
  }
  func.func @transform_12(%arg0: i32, %arg1: i32) -> (i32, i32, i32) {
    %c0_i32 = arith.constant 0 : i32
    %c0_i32_0 = arith.constant 0 : i32
    return %arg0, %arg1, %c0_i32 : i32, i32, i32
  }
}

module attributes {stable_mosaic.version = 11 : i64} {
  func.func @_ln_qkv_kernel(%arg0: i32, %arg1: i32, %arg2: memref<1x8x32xf32, #tpu.memory_space<vmem>>, %arg3: memref<1x32xf32, #tpu.memory_space<vmem>>, %arg4: memref<1x32xf32, #tpu.memory_space<vmem>>, %arg5: memref<32x96xbf16, #tpu.memory_space<vmem>>, %arg6: memref<1x96xf32, #tpu.memory_space<vmem>>, %arg7: memref<1x8x32xbf16, #tpu.memory_space<vmem>>, %arg8: memref<1x8x32xbf16, #tpu.memory_space<vmem>>, %arg9: memref<1x8x32xbf16, #tpu.memory_space<vmem>>) attributes {dimension_semantics = [#tpu.dimension_semantics<parallel>, #tpu.dimension_semantics<parallel>], iteration_bounds = array<i64: 2, 1>, scalar_prefetch = 0 : i64, scratch_operands = 0 : i64, tpu.core_type = #tpu.core_type<tc>, window_params = [{transform_indices = @transform_0, window_bounds = array<i64: 1, 8, 32>}, {pipeline_mode = #tpu.pipeline_mode<synchronous>, transform_indices = @transform_1, window_bounds = array<i64: 1, 32>}, {pipeline_mode = #tpu.pipeline_mode<synchronous>, transform_indices = @transform_2, window_bounds = array<i64: 1, 32>}, {pipeline_mode = #tpu.pipeline_mode<synchronous>, transform_indices = @transform_3, window_bounds = array<i64: 32, 96>}, {pipeline_mode = #tpu.pipeline_mode<synchronous>, transform_indices = @transform_4, window_bounds = array<i64: 1, 96>}, {transform_indices = @transform_5, window_bounds = array<i64: 1, 8, 32>}, {transform_indices = @transform_6, window_bounds = array<i64: 1, 8, 32>}, {transform_indices = @transform_7, window_bounds = array<i64: 1, 8, 32>}]} {
    %c0 = arith.constant 0 : index
    %c0_0 = arith.constant 0 : index
    %c0_1 = arith.constant 0 : index
    %0 = vector.load %arg2[%c0, %c0_0, %c0_1] : memref<1x8x32xf32, #tpu.memory_space<vmem>>, vector<1x8x32xf32>
    %1 = vector.shape_cast %0 : vector<1x8x32xf32> to vector<8x32xf32>
    %c0_2 = arith.constant 0 : index
    %c0_3 = arith.constant 0 : index
    %2 = vector.load %arg3[%c0_2, %c0_3] : memref<1x32xf32, #tpu.memory_space<vmem>>, vector<1x32xf32>
    %3 = vector.shape_cast %2 : vector<1x32xf32> to vector<32xf32>
    %c0_4 = arith.constant 0 : index
    %c0_5 = arith.constant 0 : index
    %4 = vector.load %arg4[%c0_4, %c0_5] : memref<1x32xf32, #tpu.memory_space<vmem>>, vector<1x32xf32>
    %5 = vector.shape_cast %4 : vector<1x32xf32> to vector<32xf32>
    %cst = arith.constant dense<0.000000e+00> : vector<8xf32>
    %6 = vector.multi_reduction <add>, %1, %cst [1] : vector<8x32xf32> to vector<8xf32>
    %7 = vector.shape_cast %6 : vector<8xf32> to vector<8x1xf32>
    %cst_6 = arith.constant 3.200000e+01 : f32
    %8 = vector.broadcast %cst_6 : f32 to vector<8x1xf32>
    %9 = arith.divf %7, %8 : vector<8x1xf32>
    %10 = vector.broadcast %9 : vector<8x1xf32> to vector<8x32xf32>
    %11 = arith.subf %1, %10 : vector<8x32xf32>
    %12 = arith.mulf %11, %11 : vector<8x32xf32>
    %cst_7 = arith.constant dense<0.000000e+00> : vector<8xf32>
    %13 = vector.multi_reduction <add>, %12, %cst_7 [1] : vector<8x32xf32> to vector<8xf32>
    %14 = vector.shape_cast %13 : vector<8xf32> to vector<8x1xf32>
    %cst_8 = arith.constant 3.200000e+01 : f32
    %15 = vector.broadcast %cst_8 : f32 to vector<8x1xf32>
    %16 = arith.divf %14, %15 : vector<8x1xf32>
    %cst_9 = arith.constant 9.99999974E-6 : f32
    %17 = vector.broadcast %cst_9 : f32 to vector<8x1xf32>
    %18 = arith.addf %16, %17 : vector<8x1xf32>
    %19 = math.rsqrt %18 : vector<8x1xf32>
    %20 = vector.broadcast %19 : vector<8x1xf32> to vector<8x32xf32>
    %21 = arith.mulf %11, %20 : vector<8x32xf32>
    %22 = vector.shape_cast %3 : vector<32xf32> to vector<1x32xf32>
    %23 = vector.broadcast %22 : vector<1x32xf32> to vector<8x32xf32>
    %24 = arith.mulf %21, %23 : vector<8x32xf32>
    %25 = vector.shape_cast %5 : vector<32xf32> to vector<1x32xf32>
    %26 = vector.broadcast %25 : vector<1x32xf32> to vector<8x32xf32>
    %27 = arith.addf %24, %26 : vector<8x32xf32>
    %28 = arith.truncf %27 : vector<8x32xf32> to vector<8x32xbf16>
    %c0_10 = arith.constant 0 : index
    %c0_11 = arith.constant 0 : index
    %29 = vector.load %arg5[%c0_10, %c0_11] : memref<32x96xbf16, #tpu.memory_space<vmem>>, vector<32x96xbf16>
    %cst_12 = arith.constant dense<0.000000e+00> : vector<8x96xf32>
    %30 = tpu.matmul %28, %29, %cst_12 {dimension_numbers = #tpu.dot_dimension_numbers<[1], [0], [0], [1], [0, 0, 1, 1], [], []>} : vector<8x32xbf16>, vector<32x96xbf16>, vector<8x96xf32> -> vector<8x96xf32>
    %c0_13 = arith.constant 0 : index
    %c0_14 = arith.constant 0 : index
    %31 = vector.load %arg6[%c0_13, %c0_14] : memref<1x96xf32, #tpu.memory_space<vmem>>, vector<1x96xf32>
    %32 = vector.shape_cast %31 : vector<1x96xf32> to vector<96xf32>
    %33 = vector.shape_cast %32 : vector<96xf32> to vector<1x96xf32>
    %34 = vector.broadcast %33 : vector<1x96xf32> to vector<8x96xf32>
    %35 = arith.addf %30, %34 : vector<8x96xf32>
    %36 = vector.extract_strided_slice %35 {offsets = [0, 0], sizes = [8, 32], strides = [1, 1]} : vector<8x96xf32> to vector<8x32xf32>
    %cst_15 = arith.constant 0.353553385 : f32
    %37 = vector.broadcast %cst_15 : f32 to vector<8x32xf32>
    %38 = arith.mulf %36, %37 : vector<8x32xf32>
    %39 = arith.truncf %38 : vector<8x32xf32> to vector<8x32xbf16>
    %c0_16 = arith.constant 0 : index
    %c0_17 = arith.constant 0 : index
    %c0_18 = arith.constant 0 : index
    %40 = vector.load %arg7[%c0_16, %c0_17, %c0_18] : memref<1x8x32xbf16, #tpu.memory_space<vmem>>, vector<1x8x32xbf16>
    %41 = vector.shape_cast %40 : vector<1x8x32xbf16> to vector<8x32xbf16>
    %42 = vector.shape_cast %39 : vector<8x32xbf16> to vector<1x8x32xbf16>
    tpu.vector_store %arg7[%c0_16, %c0_17, %c0_18], %42 {strides = array<i32>} : memref<1x8x32xbf16, #tpu.memory_space<vmem>>, vector<1x8x32xbf16>,
    %43 = vector.extract_strided_slice %35 {offsets = [0, 32], sizes = [8, 32], strides = [1, 1]} : vector<8x96xf32> to vector<8x32xf32>
    %44 = arith.truncf %43 : vector<8x32xf32> to vector<8x32xbf16>
    %c0_19 = arith.constant 0 : index
    %c0_20 = arith.constant 0 : index
    %c0_21 = arith.constant 0 : index
    %45 = vector.load %arg8[%c0_19, %c0_20, %c0_21] : memref<1x8x32xbf16, #tpu.memory_space<vmem>>, vector<1x8x32xbf16>
    %46 = vector.shape_cast %45 : vector<1x8x32xbf16> to vector<8x32xbf16>
    %47 = vector.shape_cast %44 : vector<8x32xbf16> to vector<1x8x32xbf16>
    tpu.vector_store %arg8[%c0_19, %c0_20, %c0_21], %47 {strides = array<i32>} : memref<1x8x32xbf16, #tpu.memory_space<vmem>>, vector<1x8x32xbf16>,
    %48 = vector.extract_strided_slice %35 {offsets = [0, 64], sizes = [8, 32], strides = [1, 1]} : vector<8x96xf32> to vector<8x32xf32>
    %49 = arith.truncf %48 : vector<8x32xf32> to vector<8x32xbf16>
    %c0_22 = arith.constant 0 : index
    %c0_23 = arith.constant 0 : index
    %c0_24 = arith.constant 0 : index
    %50 = vector.load %arg9[%c0_22, %c0_23, %c0_24] : memref<1x8x32xbf16, #tpu.memory_space<vmem>>, vector<1x8x32xbf16>
    %51 = vector.shape_cast %50 : vector<1x8x32xbf16> to vector<8x32xbf16>
    %52 = vector.shape_cast %49 : vector<8x32xbf16> to vector<1x8x32xbf16>
    tpu.vector_store %arg9[%c0_22, %c0_23, %c0_24], %52 {strides = array<i32>} : memref<1x8x32xbf16, #tpu.memory_space<vmem>>, vector<1x8x32xbf16>,
    return
  }
  func.func @transform_0(%arg0: i32, %arg1: i32) -> (i32, i32, i32) {
    %c0_i32 = arith.constant 0 : i32
    %c0_i32_0 = arith.constant 0 : i32
    return %arg0, %arg1, %c0_i32 : i32, i32, i32
  }
  func.func @transform_1(%arg0: i32, %arg1: i32) -> (i32, i32) {
    %c0_i32 = arith.constant 0 : i32
    %c0_i32_0 = arith.constant 0 : i32
    %c0_i32_1 = arith.constant 0 : i32
    return %c0_i32, %c0_i32_0 : i32, i32
  }
  func.func @transform_2(%arg0: i32, %arg1: i32) -> (i32, i32) {
    %c0_i32 = arith.constant 0 : i32
    %c0_i32_0 = arith.constant 0 : i32
    %c0_i32_1 = arith.constant 0 : i32
    return %c0_i32, %c0_i32_0 : i32, i32
  }
  func.func @transform_3(%arg0: i32, %arg1: i32) -> (i32, i32) {
    %c0_i32 = arith.constant 0 : i32
    %c0_i32_0 = arith.constant 0 : i32
    %c0_i32_1 = arith.constant 0 : i32
    return %c0_i32, %c0_i32_0 : i32, i32
  }
  func.func @transform_4(%arg0: i32, %arg1: i32) -> (i32, i32) {
    %c0_i32 = arith.constant 0 : i32
    %c0_i32_0 = arith.constant 0 : i32
    %c0_i32_1 = arith.constant 0 : i32
    return %c0_i32, %c0_i32_0 : i32, i32
  }
  func.func @transform_5(%arg0: i32, %arg1: i32) -> (i32, i32, i32) {
    %c0_i32 = arith.constant 0 : i32
    %c0_i32_0 = arith.constant 0 : i32
    return %arg0, %arg1, %c0_i32 : i32, i32, i32
  }
  func.func @transform_6(%arg0: i32, %arg1: i32) -> (i32, i32, i32) {
    %c0_i32 = arith.constant 0 : i32
    %c0_i32_0 = arith.constant 0 : i32
    return %arg0, %arg1, %c0_i32 : i32, i32, i32
  }
  func.func @transform_7(%arg0: i32, %arg1: i32) -> (i32, i32, i32) {
    %c0_i32 = arith.constant 0 : i32
    %c0_i32_0 = arith.constant 0 : i32
    return %arg0, %arg1, %c0_i32 : i32, i32, i32
  }
}

module attributes {stable_mosaic.version = 11 : i64} {
  func.func @_ln_qkv_kernel(%arg0: i32, %arg1: i32, %arg2: memref<1x8x32xf32, #tpu.memory_space<vmem>>, %arg3: memref<1x32xf32, #tpu.memory_space<vmem>>, %arg4: memref<1x32xf32, #tpu.memory_space<vmem>>, %arg5: memref<32x96xbf16, #tpu.memory_space<vmem>>, %arg6: memref<1x96xf32, #tpu.memory_space<vmem>>, %arg7: memref<1x8x32xbf16, #tpu.memory_space<vmem>>, %arg8: memref<1x8x32xbf16, #tpu.memory_space<vmem>>, %arg9: memref<1x8x32xbf16, #tpu.memory_space<vmem>>) attributes {dimension_semantics = [#tpu.dimension_semantics<parallel>, #tpu.dimension_semantics<parallel>], iteration_bounds = array<i64: 2, 1>, scalar_prefetch = 0 : i64, scratch_operands = 0 : i64, tpu.core_type = #tpu.core_type<tc>, window_params = [{transform_indices = @transform_0, window_bounds = array<i64: 1, 8, 32>}, {pipeline_mode = #tpu.pipeline_mode<synchronous>, transform_indices = @transform_1, window_bounds = array<i64: 1, 32>}, {pipeline_mode = #tpu.pipeline_mode<synchronous>, transform_indices = @transform_2, window_bounds = array<i64: 1, 32>}, {pipeline_mode = #tpu.pipeline_mode<synchronous>, transform_indices = @transform_3, window_bounds = array<i64: 32, 96>}, {pipeline_mode = #tpu.pipeline_mode<synchronous>, transform_indices = @transform_4, window_bounds = array<i64: 1, 96>}, {transform_indices = @transform_5, window_bounds = array<i64: 1, 8, 32>}, {transform_indices = @transform_6, window_bounds = array<i64: 1, 8, 32>}, {transform_indices = @transform_7, window_bounds = array<i64: 1, 8, 32>}]} {
    %c0 = arith.constant 0 : index
    %c0_0 = arith.constant 0 : index
    %c0_1 = arith.constant 0 : index
    %0 = vector.load %arg2[%c0, %c0_0, %c0_1] : memref<1x8x32xf32, #tpu.memory_space<vmem>>, vector<1x8x32xf32>
    %1 = vector.shape_cast %0 : vector<1x8x32xf32> to vector<8x32xf32>
    %c0_2 = arith.constant 0 : index
    %c0_3 = arith.constant 0 : index
    %2 = vector.load %arg3[%c0_2, %c0_3] : memref<1x32xf32, #tpu.memory_space<vmem>>, vector<1x32xf32>
    %3 = vector.shape_cast %2 : vector<1x32xf32> to vector<32xf32>
    %c0_4 = arith.constant 0 : index
    %c0_5 = arith.constant 0 : index
    %4 = vector.load %arg4[%c0_4, %c0_5] : memref<1x32xf32, #tpu.memory_space<vmem>>, vector<1x32xf32>
    %5 = vector.shape_cast %4 : vector<1x32xf32> to vector<32xf32>
    %cst = arith.constant dense<0.000000e+00> : vector<8xf32>
    %6 = vector.multi_reduction <add>, %1, %cst [1] : vector<8x32xf32> to vector<8xf32>
    %7 = vector.shape_cast %6 : vector<8xf32> to vector<8x1xf32>
    %cst_6 = arith.constant 3.200000e+01 : f32
    %8 = vector.broadcast %cst_6 : f32 to vector<8x1xf32>
    %9 = arith.divf %7, %8 : vector<8x1xf32>
    %10 = vector.broadcast %9 : vector<8x1xf32> to vector<8x32xf32>
    %11 = arith.subf %1, %10 : vector<8x32xf32>
    %12 = arith.mulf %11, %11 : vector<8x32xf32>
    %cst_7 = arith.constant dense<0.000000e+00> : vector<8xf32>
    %13 = vector.multi_reduction <add>, %12, %cst_7 [1] : vector<8x32xf32> to vector<8xf32>
    %14 = vector.shape_cast %13 : vector<8xf32> to vector<8x1xf32>
    %cst_8 = arith.constant 3.200000e+01 : f32
    %15 = vector.broadcast %cst_8 : f32 to vector<8x1xf32>
    %16 = arith.divf %14, %15 : vector<8x1xf32>
    %cst_9 = arith.constant 9.99999974E-6 : f32
    %17 = vector.broadcast %cst_9 : f32 to vector<8x1xf32>
    %18 = arith.addf %16, %17 : vector<8x1xf32>
    %19 = math.rsqrt %18 : vector<8x1xf32>
    %20 = vector.broadcast %19 : vector<8x1xf32> to vector<8x32xf32>
    %21 = arith.mulf %11, %20 : vector<8x32xf32>
    %22 = vector.shape_cast %3 : vector<32xf32> to vector<1x32xf32>
    %23 = vector.broadcast %22 : vector<1x32xf32> to vector<8x32xf32>
    %24 = arith.mulf %21, %23 : vector<8x32xf32>
    %25 = vector.shape_cast %5 : vector<32xf32> to vector<1x32xf32>
    %26 = vector.broadcast %25 : vector<1x32xf32> to vector<8x32xf32>
    %27 = arith.addf %24, %26 : vector<8x32xf32>
    %28 = arith.truncf %27 : vector<8x32xf32> to vector<8x32xbf16>
    %c0_10 = arith.constant 0 : index
    %c0_11 = arith.constant 0 : index
    %29 = vector.load %arg5[%c0_10, %c0_11] : memref<32x96xbf16, #tpu.memory_space<vmem>>, vector<32x96xbf16>
    %cst_12 = arith.constant dense<0.000000e+00> : vector<8x96xf32>
    %30 = tpu.matmul %28, %29, %cst_12 {dimension_numbers = #tpu.dot_dimension_numbers<[1], [0], [0], [1], [0, 0, 1, 1], [], []>} : vector<8x32xbf16>, vector<32x96xbf16>, vector<8x96xf32> -> vector<8x96xf32>
    %c0_13 = arith.constant 0 : index
    %c0_14 = arith.constant 0 : index
    %31 = vector.load %arg6[%c0_13, %c0_14] : memref<1x96xf32, #tpu.memory_space<vmem>>, vector<1x96xf32>
    %32 = vector.shape_cast %31 : vector<1x96xf32> to vector<96xf32>
    %33 = vector.shape_cast %32 : vector<96xf32> to vector<1x96xf32>
    %34 = vector.broadcast %33 : vector<1x96xf32> to vector<8x96xf32>
    %35 = arith.addf %30, %34 : vector<8x96xf32>
    %36 = vector.extract_strided_slice %35 {offsets = [0, 0], sizes = [8, 32], strides = [1, 1]} : vector<8x96xf32> to vector<8x32xf32>
    %cst_15 = arith.constant 0.353553385 : f32
    %37 = vector.broadcast %cst_15 : f32 to vector<8x32xf32>
    %38 = arith.mulf %36, %37 : vector<8x32xf32>
    %39 = arith.truncf %38 : vector<8x32xf32> to vector<8x32xbf16>
    %c0_16 = arith.constant 0 : index
    %c0_17 = arith.constant 0 : index
    %c0_18 = arith.constant 0 : index
    %40 = vector.load %arg7[%c0_16, %c0_17, %c0_18] : memref<1x8x32xbf16, #tpu.memory_space<vmem>>, vector<1x8x32xbf16>
    %41 = vector.shape_cast %40 : vector<1x8x32xbf16> to vector<8x32xbf16>
    %42 = vector.shape_cast %39 : vector<8x32xbf16> to vector<1x8x32xbf16>
    tpu.vector_store %arg7[%c0_16, %c0_17, %c0_18], %42 {strides = array<i32>} : memref<1x8x32xbf16, #tpu.memory_space<vmem>>, vector<1x8x32xbf16>,
    %43 = vector.extract_strided_slice %35 {offsets = [0, 32], sizes = [8, 32], strides = [1, 1]} : vector<8x96xf32> to vector<8x32xf32>
    %44 = arith.truncf %43 : vector<8x32xf32> to vector<8x32xbf16>
    %c0_19 = arith.constant 0 : index
    %c0_20 = arith.constant 0 : index
    %c0_21 = arith.constant 0 : index
    %45 = vector.load %arg8[%c0_19, %c0_20, %c0_21] : memref<1x8x32xbf16, #tpu.memory_space<vmem>>, vector<1x8x32xbf16>
    %46 = vector.shape_cast %45 : vector<1x8x32xbf16> to vector<8x32xbf16>
    %47 = vector.shape_cast %44 : vector<8x32xbf16> to vector<1x8x32xbf16>
    tpu.vector_store %arg8[%c0_19, %c0_20, %c0_21], %47 {strides = array<i32>} : memref<1x8x32xbf16, #tpu.memory_space<vmem>>, vector<1x8x32xbf16>,
    %48 = vector.extract_strided_slice %35 {offsets = [0, 64], sizes = [8, 32], strides = [1, 1]} : vector<8x96xf32> to vector<8x32xf32>
    %49 = arith.truncf %48 : vector<8x32xf32> to vector<8x32xbf16>
    %c0_22 = arith.constant 0 : index
    %c0_23 = arith.constant 0 : index
    %c0_24 = arith.constant 0 : index
    %50 = vector.load %arg9[%c0_22, %c0_23, %c0_24] : memref<1x8x32xbf16, #tpu.memory_space<vmem>>, vector<1x8x32xbf16>
    %51 = vector.shape_cast %50 : vector<1x8x32xbf16> to vector<8x32xbf16>
    %52 = vector.shape_cast %49 : vector<8x32xbf16> to vector<1x8x32xbf16>
    tpu.vector_store %arg9[%c0_22, %c0_23, %c0_24], %52 {strides = array<i32>} : memref<1x8x32xbf16, #tpu.memory_space<vmem>>, vector<1x8x32xbf16>,
    return
  }
  func.func @transform_0(%arg0: i32, %arg1: i32) -> (i32, i32, i32) {
    %c0_i32 = arith.constant 0 : i32
    %c0_i32_0 = arith.constant 0 : i32
    return %arg0, %arg1, %c0_i32 : i32, i32, i32
  }
  func.func @transform_1(%arg0: i32, %arg1: i32) -> (i32, i32) {
    %c0_i32 = arith.constant 0 : i32
    %c0_i32_0 = arith.constant 0 : i32
    %c0_i32_1 = arith.constant 0 : i32
    return %c0_i32, %c0_i32_0 : i32, i32
  }
  func.func @transform_2(%arg0: i32, %arg1: i32) -> (i32, i32) {
    %c0_i32 = arith.constant 0 : i32
    %c0_i32_0 = arith.constant 0 : i32
    %c0_i32_1 = arith.constant 0 : i32
    return %c0_i32, %c0_i32_0 : i32, i32
  }
  func.func @transform_3(%arg0: i32, %arg1: i32) -> (i32, i32) {
    %c0_i32 = arith.constant 0 : i32
    %c0_i32_0 = arith.constant 0 : i32
    %c0_i32_1 = arith.constant 0 : i32
    return %c0_i32, %c0_i32_0 : i32, i32
  }
  func.func @transform_4(%arg0: i32, %arg1: i32) -> (i32, i32) {
    %c0_i32 = arith.constant 0 : i32
    %c0_i32_0 = arith.constant 0 : i32
    %c0_i32_1 = arith.constant 0 : i32
    return %c0_i32, %c0_i32_0 : i32, i32
  }
  func.func @transform_5(%arg0: i32, %arg1: i32) -> (i32, i32, i32) {
    %c0_i32 = arith.constant 0 : i32
    %c0_i32_0 = arith.constant 0 : i32
    return %arg0, %arg1, %c0_i32 : i32, i32, i32
  }
  func.func @transform_6(%arg0: i32, %arg1: i32) -> (i32, i32, i32) {
    %c0_i32 = arith.constant 0 : i32
    %c0_i32_0 = arith.constant 0 : i32
    return %arg0, %arg1, %c0_i32 : i32, i32, i32
  }
  func.func @transform_7(%arg0: i32, %arg1: i32) -> (i32, i32, i32) {
    %c0_i32 = arith.constant 0 : i32
    %c0_i32_0 = arith.constant 0 : i32
    return %arg0, %arg1, %c0_i32 : i32, i32, i32
  }
}

module attributes {stable_mosaic.version = 11 : i64} {
  func.func @_attn_mlp_kernel(%arg0: i32, %arg1: i32, %arg2: memref<1x8x32xf32, #tpu.memory_space<vmem>>, %arg3: memref<1x8x32xbf16, #tpu.memory_space<vmem>>, %arg4: memref<1x8x32xbf16, #tpu.memory_space<vmem>>, %arg5: memref<1x8x32xbf16, #tpu.memory_space<vmem>>, %arg6: memref<32x32xbf16, #tpu.memory_space<vmem>>, %arg7: memref<1x32xf32, #tpu.memory_space<vmem>>, %arg8: memref<1x32xf32, #tpu.memory_space<vmem>>, %arg9: memref<1x32xf32, #tpu.memory_space<vmem>>, %arg10: memref<32x128xbf16, #tpu.memory_space<vmem>>, %arg11: memref<1x128xf32, #tpu.memory_space<vmem>>, %arg12: memref<128x32xbf16, #tpu.memory_space<vmem>>, %arg13: memref<1x32xf32, #tpu.memory_space<vmem>>, %arg14: memref<1x8x32xf32, #tpu.memory_space<vmem>>, %arg15: memref<8x32xbf16, #tpu.memory_space<vmem>>) attributes {dimension_semantics = [#tpu.dimension_semantics<parallel>, #tpu.dimension_semantics<parallel>], iteration_bounds = array<i64: 2, 1>, scalar_prefetch = 0 : i64, scratch_operands = 1 : i64, tpu.core_type = #tpu.core_type<tc>, window_params = [{transform_indices = @transform_0, window_bounds = array<i64: 1, 8, 32>}, {transform_indices = @transform_1, window_bounds = array<i64: 1, 8, 32>}, {transform_indices = @transform_2, window_bounds = array<i64: 1, 8, 32>}, {transform_indices = @transform_3, window_bounds = array<i64: 1, 8, 32>}, {pipeline_mode = #tpu.pipeline_mode<synchronous>, transform_indices = @transform_4, window_bounds = array<i64: 32, 32>}, {pipeline_mode = #tpu.pipeline_mode<synchronous>, transform_indices = @transform_5, window_bounds = array<i64: 1, 32>}, {pipeline_mode = #tpu.pipeline_mode<synchronous>, transform_indices = @transform_6, window_bounds = array<i64: 1, 32>}, {pipeline_mode = #tpu.pipeline_mode<synchronous>, transform_indices = @transform_7, window_bounds = array<i64: 1, 32>}, {pipeline_mode = #tpu.pipeline_mode<synchronous>, transform_indices = @transform_8, window_bounds = array<i64: 32, 128>}, {pipeline_mode = #tpu.pipeline_mode<synchronous>, transform_indices = @transform_9, window_bounds = array<i64: 1, 128>}, {pipeline_mode = #tpu.pipeline_mode<synchronous>, transform_indices = @transform_10, window_bounds = array<i64: 128, 32>}, {pipeline_mode = #tpu.pipeline_mode<synchronous>, transform_indices = @transform_11, window_bounds = array<i64: 1, 32>}, {transform_indices = @transform_12, window_bounds = array<i64: 1, 8, 32>}]} {
    %c0 = arith.constant 0 : index
    %c0_0 = arith.constant 0 : index
    %c0_1 = arith.constant 0 : index
    %0 = vector.load %arg2[%c0, %c0_0, %c0_1] : memref<1x8x32xf32, #tpu.memory_space<vmem>>, vector<1x8x32xf32>
    %1 = vector.shape_cast %0 : vector<1x8x32xf32> to vector<8x32xf32>
    %c0_2 = arith.constant 0 : index
    %c0_3 = arith.constant 0 : index
    %c0_4 = arith.constant 0 : index
    %2 = vector.load %arg3[%c0_2, %c0_3, %c0_4] : memref<1x8x32xbf16, #tpu.memory_space<vmem>>, vector<1x8x32xbf16>
    %3 = vector.shape_cast %2 : vector<1x8x32xbf16> to vector<8x32xbf16>
    %c0_5 = arith.constant 0 : index
    %c0_6 = arith.constant 0 : index
    %c0_7 = arith.constant 0 : index
    %4 = vector.load %arg4[%c0_5, %c0_6, %c0_7] : memref<1x8x32xbf16, #tpu.memory_space<vmem>>, vector<1x8x32xbf16>
    %5 = vector.shape_cast %4 : vector<1x8x32xbf16> to vector<8x32xbf16>
    %c0_8 = arith.constant 0 : index
    %c0_9 = arith.constant 0 : index
    %c0_10 = arith.constant 0 : index
    %6 = vector.load %arg5[%c0_8, %c0_9, %c0_10] : memref<1x8x32xbf16, #tpu.memory_space<vmem>>, vector<1x8x32xbf16>
    %7 = vector.shape_cast %6 : vector<1x8x32xbf16> to vector<8x32xbf16>
    %8 = vector.extract_strided_slice %3 {offsets = [0, 0], sizes = [8, 8], strides = [1, 1]} : vector<8x32xbf16> to vector<8x8xbf16>
    %9 = vector.extract_strided_slice %5 {offsets = [0, 0], sizes = [8, 8], strides = [1, 1]} : vector<8x32xbf16> to vector<8x8xbf16>
    %10 = vector.extract_strided_slice %7 {offsets = [0, 0], sizes = [8, 8], strides = [1, 1]} : vector<8x32xbf16> to vector<8x8xbf16>
    %cst = arith.constant dense<0.000000e+00> : vector<8x8xf32>
    %11 = tpu.matmul %8, %9, %cst {dimension_numbers = #tpu.dot_dimension_numbers<[1], [1], [0], [0], [0, 0, 1, 0], [], []>} : vector<8x8xbf16>, vector<8x8xbf16>, vector<8x8xf32> -> vector<8x8xf32>
    %cst_11 = arith.constant dense<0xFF800000> : vector<8xf32>
    %12 = vector.multi_reduction <maximumf>, %11, %cst_11 [1] : vector<8x8xf32> to vector<8xf32>
    %13 = vector.shape_cast %12 : vector<8xf32> to vector<8x1xf32>
    %14 = vector.broadcast %13 : vector<8x1xf32> to vector<8x8xf32>
    %15 = arith.subf %11, %14 : vector<8x8xf32>
    %16 = math.exp %15 : vector<8x8xf32>
    %cst_12 = arith.constant dense<0.000000e+00> : vector<8xf32>
    %17 = vector.multi_reduction <add>, %16, %cst_12 [1] : vector<8x8xf32> to vector<8xf32>
    %18 = vector.shape_cast %17 : vector<8xf32> to vector<8x1xf32>
    %19 = tpu.reciprocal %18 {approx = true} : vector<8x1xf32> -> vector<8x1xf32>
    %20 = vector.broadcast %19 : vector<8x1xf32> to vector<8x8xf32>
    %21 = arith.mulf %16, %20 : vector<8x8xf32>
    %22 = arith.truncf %21 : vector<8x8xf32> to vector<8x8xbf16>
    %cst_13 = arith.constant dense<0.000000e+00> : vector<8x8xf32>
    %23 = tpu.matmul %22, %10, %cst_13 {dimension_numbers = #tpu.dot_dimension_numbers<[1], [0], [0], [1], [0, 0, 1, 1], [], []>} : vector<8x8xbf16>, vector<8x8xbf16>, vector<8x8xf32> -> vector<8x8xf32>
    %24 = arith.truncf %23 : vector<8x8xf32> to vector<8x8xbf16>
    %c0_14 = arith.constant 0 : index
    %c0_15 = arith.constant 0 : index
    %25 = vector.load %arg15[%c0_14, %c0_15] : memref<8x32xbf16, #tpu.memory_space<vmem>>, vector<8x8xbf16>
    tpu.vector_store %arg15[%c0_14, %c0_15], %24 {strides = array<i32>} : memref<8x32xbf16, #tpu.memory_space<vmem>>, vector<8x8xbf16>,
    %26 = vector.extract_strided_slice %3 {offsets = [0, 8], sizes = [8, 8], strides = [1, 1]} : vector<8x32xbf16> to vector<8x8xbf16>
    %27 = vector.extract_strided_slice %5 {offsets = [0, 8], sizes = [8, 8], strides = [1, 1]} : vector<8x32xbf16> to vector<8x8xbf16>
    %28 = vector.extract_strided_slice %7 {offsets = [0, 8], sizes = [8, 8], strides = [1, 1]} : vector<8x32xbf16> to vector<8x8xbf16>
    %cst_16 = arith.constant dense<0.000000e+00> : vector<8x8xf32>
    %29 = tpu.matmul %26, %27, %cst_16 {dimension_numbers = #tpu.dot_dimension_numbers<[1], [1], [0], [0], [0, 0, 1, 0], [], []>} : vector<8x8xbf16>, vector<8x8xbf16>, vector<8x8xf32> -> vector<8x8xf32>
    %cst_17 = arith.constant dense<0xFF800000> : vector<8xf32>
    %30 = vector.multi_reduction <maximumf>, %29, %cst_17 [1] : vector<8x8xf32> to vector<8xf32>
    %31 = vector.shape_cast %30 : vector<8xf32> to vector<8x1xf32>
    %32 = vector.broadcast %31 : vector<8x1xf32> to vector<8x8xf32>
    %33 = arith.subf %29, %32 : vector<8x8xf32>
    %34 = math.exp %33 : vector<8x8xf32>
    %cst_18 = arith.constant dense<0.000000e+00> : vector<8xf32>
    %35 = vector.multi_reduction <add>, %34, %cst_18 [1] : vector<8x8xf32> to vector<8xf32>
    %36 = vector.shape_cast %35 : vector<8xf32> to vector<8x1xf32>
    %37 = tpu.reciprocal %36 {approx = true} : vector<8x1xf32> -> vector<8x1xf32>
    %38 = vector.broadcast %37 : vector<8x1xf32> to vector<8x8xf32>
    %39 = arith.mulf %34, %38 : vector<8x8xf32>
    %40 = arith.truncf %39 : vector<8x8xf32> to vector<8x8xbf16>
    %cst_19 = arith.constant dense<0.000000e+00> : vector<8x8xf32>
    %41 = tpu.matmul %40, %28, %cst_19 {dimension_numbers = #tpu.dot_dimension_numbers<[1], [0], [0], [1], [0, 0, 1, 1], [], []>} : vector<8x8xbf16>, vector<8x8xbf16>, vector<8x8xf32> -> vector<8x8xf32>
    %42 = arith.truncf %41 : vector<8x8xf32> to vector<8x8xbf16>
    %c0_20 = arith.constant 0 : index
    %c8 = arith.constant 8 : index
    %43 = vector.load %arg15[%c0_20, %c8] : memref<8x32xbf16, #tpu.memory_space<vmem>>, vector<8x8xbf16>
    tpu.vector_store %arg15[%c0_20, %c8], %42 {strides = array<i32>} : memref<8x32xbf16, #tpu.memory_space<vmem>>, vector<8x8xbf16>,
    %44 = vector.extract_strided_slice %3 {offsets = [0, 16], sizes = [8, 8], strides = [1, 1]} : vector<8x32xbf16> to vector<8x8xbf16>
    %45 = vector.extract_strided_slice %5 {offsets = [0, 16], sizes = [8, 8], strides = [1, 1]} : vector<8x32xbf16> to vector<8x8xbf16>
    %46 = vector.extract_strided_slice %7 {offsets = [0, 16], sizes = [8, 8], strides = [1, 1]} : vector<8x32xbf16> to vector<8x8xbf16>
    %cst_21 = arith.constant dense<0.000000e+00> : vector<8x8xf32>
    %47 = tpu.matmul %44, %45, %cst_21 {dimension_numbers = #tpu.dot_dimension_numbers<[1], [1], [0], [0], [0, 0, 1, 0], [], []>} : vector<8x8xbf16>, vector<8x8xbf16>, vector<8x8xf32> -> vector<8x8xf32>
    %cst_22 = arith.constant dense<0xFF800000> : vector<8xf32>
    %48 = vector.multi_reduction <maximumf>, %47, %cst_22 [1] : vector<8x8xf32> to vector<8xf32>
    %49 = vector.shape_cast %48 : vector<8xf32> to vector<8x1xf32>
    %50 = vector.broadcast %49 : vector<8x1xf32> to vector<8x8xf32>
    %51 = arith.subf %47, %50 : vector<8x8xf32>
    %52 = math.exp %51 : vector<8x8xf32>
    %cst_23 = arith.constant dense<0.000000e+00> : vector<8xf32>
    %53 = vector.multi_reduction <add>, %52, %cst_23 [1] : vector<8x8xf32> to vector<8xf32>
    %54 = vector.shape_cast %53 : vector<8xf32> to vector<8x1xf32>
    %55 = tpu.reciprocal %54 {approx = true} : vector<8x1xf32> -> vector<8x1xf32>
    %56 = vector.broadcast %55 : vector<8x1xf32> to vector<8x8xf32>
    %57 = arith.mulf %52, %56 : vector<8x8xf32>
    %58 = arith.truncf %57 : vector<8x8xf32> to vector<8x8xbf16>
    %cst_24 = arith.constant dense<0.000000e+00> : vector<8x8xf32>
    %59 = tpu.matmul %58, %46, %cst_24 {dimension_numbers = #tpu.dot_dimension_numbers<[1], [0], [0], [1], [0, 0, 1, 1], [], []>} : vector<8x8xbf16>, vector<8x8xbf16>, vector<8x8xf32> -> vector<8x8xf32>
    %60 = arith.truncf %59 : vector<8x8xf32> to vector<8x8xbf16>
    %c0_25 = arith.constant 0 : index
    %c16 = arith.constant 16 : index
    %61 = vector.load %arg15[%c0_25, %c16] : memref<8x32xbf16, #tpu.memory_space<vmem>>, vector<8x8xbf16>
    tpu.vector_store %arg15[%c0_25, %c16], %60 {strides = array<i32>} : memref<8x32xbf16, #tpu.memory_space<vmem>>, vector<8x8xbf16>,
    %62 = vector.extract_strided_slice %3 {offsets = [0, 24], sizes = [8, 8], strides = [1, 1]} : vector<8x32xbf16> to vector<8x8xbf16>
    %63 = vector.extract_strided_slice %5 {offsets = [0, 24], sizes = [8, 8], strides = [1, 1]} : vector<8x32xbf16> to vector<8x8xbf16>
    %64 = vector.extract_strided_slice %7 {offsets = [0, 24], sizes = [8, 8], strides = [1, 1]} : vector<8x32xbf16> to vector<8x8xbf16>
    %cst_26 = arith.constant dense<0.000000e+00> : vector<8x8xf32>
    %65 = tpu.matmul %62, %63, %cst_26 {dimension_numbers = #tpu.dot_dimension_numbers<[1], [1], [0], [0], [0, 0, 1, 0], [], []>} : vector<8x8xbf16>, vector<8x8xbf16>, vector<8x8xf32> -> vector<8x8xf32>
    %cst_27 = arith.constant dense<0xFF800000> : vector<8xf32>
    %66 = vector.multi_reduction <maximumf>, %65, %cst_27 [1] : vector<8x8xf32> to vector<8xf32>
    %67 = vector.shape_cast %66 : vector<8xf32> to vector<8x1xf32>
    %68 = vector.broadcast %67 : vector<8x1xf32> to vector<8x8xf32>
    %69 = arith.subf %65, %68 : vector<8x8xf32>
    %70 = math.exp %69 : vector<8x8xf32>
    %cst_28 = arith.constant dense<0.000000e+00> : vector<8xf32>
    %71 = vector.multi_reduction <add>, %70, %cst_28 [1] : vector<8x8xf32> to vector<8xf32>
    %72 = vector.shape_cast %71 : vector<8xf32> to vector<8x1xf32>
    %73 = tpu.reciprocal %72 {approx = true} : vector<8x1xf32> -> vector<8x1xf32>
    %74 = vector.broadcast %73 : vector<8x1xf32> to vector<8x8xf32>
    %75 = arith.mulf %70, %74 : vector<8x8xf32>
    %76 = arith.truncf %75 : vector<8x8xf32> to vector<8x8xbf16>
    %cst_29 = arith.constant dense<0.000000e+00> : vector<8x8xf32>
    %77 = tpu.matmul %76, %64, %cst_29 {dimension_numbers = #tpu.dot_dimension_numbers<[1], [0], [0], [1], [0, 0, 1, 1], [], []>} : vector<8x8xbf16>, vector<8x8xbf16>, vector<8x8xf32> -> vector<8x8xf32>
    %78 = arith.truncf %77 : vector<8x8xf32> to vector<8x8xbf16>
    %c0_30 = arith.constant 0 : index
    %c24 = arith.constant 24 : index
    %79 = vector.load %arg15[%c0_30, %c24] : memref<8x32xbf16, #tpu.memory_space<vmem>>, vector<8x8xbf16>
    tpu.vector_store %arg15[%c0_30, %c24], %78 {strides = array<i32>} : memref<8x32xbf16, #tpu.memory_space<vmem>>, vector<8x8xbf16>,
    %c0_31 = arith.constant 0 : index
    %c0_32 = arith.constant 0 : index
    %80 = vector.load %arg15[%c0_31, %c0_32] : memref<8x32xbf16, #tpu.memory_space<vmem>>, vector<8x32xbf16>
    %c0_33 = arith.constant 0 : index
    %c0_34 = arith.constant 0 : index
    %81 = vector.load %arg6[%c0_33, %c0_34] : memref<32x32xbf16, #tpu.memory_space<vmem>>, vector<32x32xbf16>
    %cst_35 = arith.constant dense<0.000000e+00> : vector<8x32xf32>
    %82 = tpu.matmul %80, %81, %cst_35 {dimension_numbers = #tpu.dot_dimension_numbers<[1], [0], [0], [1], [0, 0, 1, 1], [], []>} : vector<8x32xbf16>, vector<32x32xbf16>, vector<8x32xf32> -> vector<8x32xf32>
    %c0_36 = arith.constant 0 : index
    %c0_37 = arith.constant 0 : index
    %83 = vector.load %arg7[%c0_36, %c0_37] : memref<1x32xf32, #tpu.memory_space<vmem>>, vector<1x32xf32>
    %84 = vector.shape_cast %83 : vector<1x32xf32> to vector<32xf32>
    %85 = vector.shape_cast %84 : vector<32xf32> to vector<1x32xf32>
    %86 = vector.broadcast %85 : vector<1x32xf32> to vector<8x32xf32>
    %87 = arith.addf %82, %86 : vector<8x32xf32>
    %88 = arith.addf %1, %87 : vector<8x32xf32>
    %c0_38 = arith.constant 0 : index
    %c0_39 = arith.constant 0 : index
    %89 = vector.load %arg8[%c0_38, %c0_39] : memref<1x32xf32, #tpu.memory_space<vmem>>, vector<1x32xf32>
    %90 = vector.shape_cast %89 : vector<1x32xf32> to vector<32xf32>
    %c0_40 = arith.constant 0 : index
    %c0_41 = arith.constant 0 : index
    %91 = vector.load %arg9[%c0_40, %c0_41] : memref<1x32xf32, #tpu.memory_space<vmem>>, vector<1x32xf32>
    %92 = vector.shape_cast %91 : vector<1x32xf32> to vector<32xf32>
    %cst_42 = arith.constant dense<0.000000e+00> : vector<8xf32>
    %93 = vector.multi_reduction <add>, %88, %cst_42 [1] : vector<8x32xf32> to vector<8xf32>
    %94 = vector.shape_cast %93 : vector<8xf32> to vector<8x1xf32>
    %cst_43 = arith.constant 3.200000e+01 : f32
    %95 = vector.broadcast %cst_43 : f32 to vector<8x1xf32>
    %96 = arith.divf %94, %95 : vector<8x1xf32>
    %97 = vector.broadcast %96 : vector<8x1xf32> to vector<8x32xf32>
    %98 = arith.subf %88, %97 : vector<8x32xf32>
    %99 = arith.mulf %98, %98 : vector<8x32xf32>
    %cst_44 = arith.constant dense<0.000000e+00> : vector<8xf32>
    %100 = vector.multi_reduction <add>, %99, %cst_44 [1] : vector<8x32xf32> to vector<8xf32>
    %101 = vector.shape_cast %100 : vector<8xf32> to vector<8x1xf32>
    %cst_45 = arith.constant 3.200000e+01 : f32
    %102 = vector.broadcast %cst_45 : f32 to vector<8x1xf32>
    %103 = arith.divf %101, %102 : vector<8x1xf32>
    %cst_46 = arith.constant 9.99999974E-6 : f32
    %104 = vector.broadcast %cst_46 : f32 to vector<8x1xf32>
    %105 = arith.addf %103, %104 : vector<8x1xf32>
    %106 = math.rsqrt %105 : vector<8x1xf32>
    %107 = vector.broadcast %106 : vector<8x1xf32> to vector<8x32xf32>
    %108 = arith.mulf %98, %107 : vector<8x32xf32>
    %109 = vector.shape_cast %90 : vector<32xf32> to vector<1x32xf32>
    %110 = vector.broadcast %109 : vector<1x32xf32> to vector<8x32xf32>
    %111 = arith.mulf %108, %110 : vector<8x32xf32>
    %112 = vector.shape_cast %92 : vector<32xf32> to vector<1x32xf32>
    %113 = vector.broadcast %112 : vector<1x32xf32> to vector<8x32xf32>
    %114 = arith.addf %111, %113 : vector<8x32xf32>
    %115 = arith.truncf %114 : vector<8x32xf32> to vector<8x32xbf16>
    %c0_47 = arith.constant 0 : index
    %c0_48 = arith.constant 0 : index
    %116 = vector.load %arg10[%c0_47, %c0_48] : memref<32x128xbf16, #tpu.memory_space<vmem>>, vector<32x128xbf16>
    %cst_49 = arith.constant dense<0.000000e+00> : vector<8x128xf32>
    %117 = tpu.matmul %115, %116, %cst_49 {dimension_numbers = #tpu.dot_dimension_numbers<[1], [0], [0], [1], [0, 0, 1, 1], [], []>} : vector<8x32xbf16>, vector<32x128xbf16>, vector<8x128xf32> -> vector<8x128xf32>
    %c0_50 = arith.constant 0 : index
    %c0_51 = arith.constant 0 : index
    %118 = vector.load %arg11[%c0_50, %c0_51] : memref<1x128xf32, #tpu.memory_space<vmem>>, vector<1x128xf32>
    %119 = vector.shape_cast %118 : vector<1x128xf32> to vector<128xf32>
    %120 = vector.shape_cast %119 : vector<128xf32> to vector<1x128xf32>
    %121 = vector.broadcast %120 : vector<1x128xf32> to vector<8x128xf32>
    %122 = arith.addf %117, %121 : vector<8x128xf32>
    %cst_52 = arith.constant 5.000000e-01 : f32
    %123 = vector.broadcast %cst_52 : f32 to vector<8x128xf32>
    %124 = arith.mulf %123, %122 : vector<8x128xf32>
    %cst_53 = arith.constant 0.707106769 : f32
    %125 = vector.broadcast %cst_53 : f32 to vector<8x128xf32>
    %126 = arith.mulf %122, %125 : vector<8x128xf32>
    %127 = math.erf %126 : vector<8x128xf32>
    %cst_54 = arith.constant 1.000000e+00 : f32
    %128 = vector.broadcast %cst_54 : f32 to vector<8x128xf32>
    %129 = arith.addf %128, %127 : vector<8x128xf32>
    %130 = arith.mulf %124, %129 : vector<8x128xf32>
    %131 = arith.truncf %130 : vector<8x128xf32> to vector<8x128xbf16>
    %c0_55 = arith.constant 0 : index
    %c0_56 = arith.constant 0 : index
    %132 = vector.load %arg12[%c0_55, %c0_56] : memref<128x32xbf16, #tpu.memory_space<vmem>>, vector<128x32xbf16>
    %cst_57 = arith.constant dense<0.000000e+00> : vector<8x32xf32>
    %133 = tpu.matmul %131, %132, %cst_57 {dimension_numbers = #tpu.dot_dimension_numbers<[1], [0], [0], [1], [0, 0, 1, 1], [], []>} : vector<8x128xbf16>, vector<128x32xbf16>, vector<8x32xf32> -> vector<8x32xf32>
    %c0_58 = arith.constant 0 : index
    %c0_59 = arith.constant 0 : index
    %134 = vector.load %arg13[%c0_58, %c0_59] : memref<1x32xf32, #tpu.memory_space<vmem>>, vector<1x32xf32>
    %135 = vector.shape_cast %134 : vector<1x32xf32> to vector<32xf32>
    %136 = vector.shape_cast %135 : vector<32xf32> to vector<1x32xf32>
    %137 = vector.broadcast %136 : vector<1x32xf32> to vector<8x32xf32>
    %138 = arith.addf %133, %137 : vector<8x32xf32>
    %139 = arith.addf %88, %138 : vector<8x32xf32>
    %c0_60 = arith.constant 0 : index
    %c0_61 = arith.constant 0 : index
    %c0_62 = arith.constant 0 : index
    %140 = vector.load %arg14[%c0_60, %c0_61, %c0_62] : memref<1x8x32xf32, #tpu.memory_space<vmem>>, vector<1x8x32xf32>
    %141 = vector.shape_cast %140 : vector<1x8x32xf32> to vector<8x32xf32>
    %142 = vector.shape_cast %139 : vector<8x32xf32> to vector<1x8x32xf32>
    tpu.vector_store %arg14[%c0_60, %c0_61, %c0_62], %142 {strides = array<i32>} : memref<1x8x32xf32, #tpu.memory_space<vmem>>, vector<1x8x32xf32>,
    return
  }
  func.func @transform_0(%arg0: i32, %arg1: i32) -> (i32, i32, i32) {
    %c0_i32 = arith.constant 0 : i32
    %c0_i32_0 = arith.constant 0 : i32
    return %arg0, %arg1, %c0_i32 : i32, i32, i32
  }
  func.func @transform_1(%arg0: i32, %arg1: i32) -> (i32, i32, i32) {
    %c0_i32 = arith.constant 0 : i32
    %c0_i32_0 = arith.constant 0 : i32
    return %arg0, %arg1, %c0_i32 : i32, i32, i32
  }
  func.func @transform_2(%arg0: i32, %arg1: i32) -> (i32, i32, i32) {
    %c0_i32 = arith.constant 0 : i32
    %c0_i32_0 = arith.constant 0 : i32
    %c0_i32_1 = arith.constant 0 : i32
    return %arg0, %c0_i32, %c0_i32_0 : i32, i32, i32
  }
  func.func @transform_3(%arg0: i32, %arg1: i32) -> (i32, i32, i32) {
    %c0_i32 = arith.constant 0 : i32
    %c0_i32_0 = arith.constant 0 : i32
    %c0_i32_1 = arith.constant 0 : i32
    return %arg0, %c0_i32, %c0_i32_0 : i32, i32, i32
  }
  func.func @transform_4(%arg0: i32, %arg1: i32) -> (i32, i32) {
    %c0_i32 = arith.constant 0 : i32
    %c0_i32_0 = arith.constant 0 : i32
    %c0_i32_1 = arith.constant 0 : i32
    return %c0_i32, %c0_i32_0 : i32, i32
  }
  func.func @transform_5(%arg0: i32, %arg1: i32) -> (i32, i32) {
    %c0_i32 = arith.constant 0 : i32
    %c0_i32_0 = arith.constant 0 : i32
    %c0_i32_1 = arith.constant 0 : i32
    return %c0_i32, %c0_i32_0 : i32, i32
  }
  func.func @transform_6(%arg0: i32, %arg1: i32) -> (i32, i32) {
    %c0_i32 = arith.constant 0 : i32
    %c0_i32_0 = arith.constant 0 : i32
    %c0_i32_1 = arith.constant 0 : i32
    return %c0_i32, %c0_i32_0 : i32, i32
  }
  func.func @transform_7(%arg0: i32, %arg1: i32) -> (i32, i32) {
    %c0_i32 = arith.constant 0 : i32
    %c0_i32_0 = arith.constant 0 : i32
    %c0_i32_1 = arith.constant 0 : i32
    return %c0_i32, %c0_i32_0 : i32, i32
  }
  func.func @transform_8(%arg0: i32, %arg1: i32) -> (i32, i32) {
    %c0_i32 = arith.constant 0 : i32
    %c0_i32_0 = arith.constant 0 : i32
    %c0_i32_1 = arith.constant 0 : i32
    return %c0_i32, %c0_i32_0 : i32, i32
  }
  func.func @transform_9(%arg0: i32, %arg1: i32) -> (i32, i32) {
    %c0_i32 = arith.constant 0 : i32
    %c0_i32_0 = arith.constant 0 : i32
    %c0_i32_1 = arith.constant 0 : i32
    return %c0_i32, %c0_i32_0 : i32, i32
  }
  func.func @transform_10(%arg0: i32, %arg1: i32) -> (i32, i32) {
    %c0_i32 = arith.constant 0 : i32
    %c0_i32_0 = arith.constant 0 : i32
    %c0_i32_1 = arith.constant 0 : i32
    return %c0_i32, %c0_i32_0 : i32, i32
  }
  func.func @transform_11(%arg0: i32, %arg1: i32) -> (i32, i32) {
    %c0_i32 = arith.constant 0 : i32
    %c0_i32_0 = arith.constant 0 : i32
    %c0_i32_1 = arith.constant 0 : i32
    return %c0_i32, %c0_i32_0 : i32, i32
  }
  func.func @transform_12(%arg0: i32, %arg1: i32) -> (i32, i32, i32) {
    %c0_i32 = arith.constant 0 : i32
    %c0_i32_0 = arith.constant 0 : i32
    return %arg0, %arg1, %c0_i32 : i32, i32, i32
  }
}

</mosaic_0001>

<bundles_post_ra>
// kernel: attention_block.2
= control target key start
LH: loop header
LB: loop body
LE: loop exit
PB: predicated region body
PF: predicated region fallthrough
CT: control target
= control target key end

     0   :  { %s744_s24 = smov 0   ;;  %s746_s25 = smov 0   ;;  %s805_s0 = inlined_call_operand.vmem [shape: f32[2,8,32], index: 0, kind: input, shape index: {}]   ;;  %s806_s1 = inlined_call_operand.vmem [shape: f32[1,32], index: 1, kind: input, shape index: {}]   ;;  %s807_s2 = inlined_call_operand.vmem [shape: f32[1,32], index: 2, kind: input, shape index: {}]   ;;  %s808_s3 = inlined_call_operand.vmem [shape: bf16[32,96], index: 3, kind: input, shape index: {}]   ;;  %s809_s4 = inlined_call_operand.vmem [shape: f32[1,96], index: 4, kind: input, shape index: {}]   ;;  %s810_s5 = inlined_call_operand.vmem [shape: bf16[2,8,32], index: 5, kind: output, shape index: {0}]   ;;  %s811_s6 = inlined_call_operand.vmem [shape: bf16[2,8,32], index: 6, kind: output, shape index: {1}]   ;;  %s812_s7 = inlined_call_operand.vmem [shape: bf16[2,8,32], index: 7, kind: output, shape index: {2}]  }
   0x1   :  { %s748_s26 = smov 0  }
   0x2 LB: > { %s30_s27 = sadd.s32 1, %s694_s25  ;;  %p618_p0 = scmp.ge.s32.totalorder %s698_s26, 1  ;;  %s698_s26 = sphi %s748_s26, %s18_s26   ;;  %s694_s25 = sphi %s746_s25, %s814_s25   ;;  %s690_s24 = sphi %s744_s24, %s813_s24  }
   0x3   : > { %p32_p1 = scmp.ge.s32.totalorder %s30_s27, 2  ;;  %p264_p2 = scmp.lt.s32.totalorder %s698_s26, 3 }
   0x5   : > { %s816_s27 = smov (%p32_p1, %s30_s27), 0  ;;  %p265_p3 = pnand %p618_p0, %p264_p2 }
   0x6   : > { %p314_p4 = scmp.lt.s32.totalorder (!%p265_p3), %s690_s24, 1  ;;  %vm346_vm0 = vcmask (!%p265_p3), 261120   ;;  %v672_v7 = vld [vmem:[%s808_s3] sm:$0xff] (!%p265_p3)   ;;  %v700_v8 = vmov (!%p265_p3), 0.0   ;;  %v673_v9 = vld [vmem:[%s808_s3 + $0x8] sm:$0xff] (!%p265_p3)   ;;  %vm701_vm1 = vmmov (!%p265_p3), 0  }
   0x7   : > { %268 = sbr.rel (%p265_p3) target bundleno = 669 (0x29d), region = 40  ;;  %636 = vmatprep.subr.bf16.mxu0 (!%p265_p3), %v700_v8  ;;  %640 = vmatprep.mubr.msk.bf16.mxu0 (!%p265_p3), %vm701_vm1, %v700_v8  ;;  %v623_v14 = vld [vmem:[%s806_s1] ss:$0 sm:$0xff] (!%p265_p3)  ;;  %vm444_vm2 = vcmask (!%p265_p3), 257024   ;;  %s702_s23 = smov (!%p265_p3), 96  }
   0x8   : > { %637 = vmatpush3.bf16.msra.mxu0 (!%p265_p3), %v672_v7  ;;  %v624_v16 = vld [vmem:[%s807_s2] ss:$0 sm:$0xff] (!%p265_p3) }
   0x9   : > { %638 = vmatprep.subr.bf16.mxu0 (!%p265_p3), %v700_v8  ;;  %v625_v20 = vld [vmem:[%s809_s4] ss:$0 sm:$0xff] (!%p265_p3) }
   0xc   : > { %639 = vmatpush3.bf16.msra.mxu0 (!%p265_p3), %v673_v9 }
   0xe   : > { %s818_s24 = smov (!%p314_p4, %s690_s24), 1 }
   0xf   : > { %s619_s28 = sshll.u32 %s818_s24, 3  ;;  %s620_s19 = sshll.u32 %s818_s24, 2 }
  0x10   : > { %s320_s8 = scalar_lea.vmem %s805_s0, %s619_s28  ;;  %s327_s22 = scalar_lea.vmem %s810_s5, %s620_s19 }
  0x11   : > { %v343_v0 = vld [vmem:[%s320_s8] sm:$0xff]  ;;  %s703_s28 = smov 64   ;;  %s334_s24 = scalar_lea.vmem %s811_s6, %s620_s19 }
  0x12   : > { %v347_v1 = vsel %vm346_vm0, %v343_v0, 0.0  ;;  %s341_s10 = scalar_lea.vmem %s812_s7, %s620_s19 }
  0x13   : > { %348 = vadd.xlane.f32.xlu0 %v347_v1 }
  0xa0   : > { %v349_v2 = vpop.xlane.xlu0 %348 }
  0xa1   : > { %v351_v3 = vmul.f32 0.03125, %v349_v2 }
  0xa3   : > { %v352_v4 = vsub.f32 %v343_v0, %v351_v3 }
  0xa5   : > { %v353_v5 = vmul.f32 %v352_v4, %v352_v4 }
  0xa7   : > { %v354_v6 = vsel %vm346_vm0, %v353_v5, 0.0 }
  0xa8   : > { %355 = vadd.xlane.f32.xlu0 %v354_v6 }
 0x135   : > { %v356_v10 = vpop.xlane.xlu0 %355 }
 0x136   : > { %v357_v11 = vmul.f32 0.03125, %v356_v10 }
 0x138   : > { %v358_v12 = vadd.f32 1e-05, %v357_v11 }
 0x13a   : > { %674 = vrsqrt.f32 %v358_v12 }
 0x144   : > { %v675_v13 = vpop.eup %674 }
 0x145   : > { %v360_v15 = vmul.f32 %v675_v13, %v352_v4 }
 0x147   : > { %v367_v17 = vmul.f32 %v623_v14, %v360_v15 }
 0x149   : > { %v374_v18 = vadd.f32 %v624_v16, %v367_v17 }
 0x14b   : > { %v375_v19 = vpack.c.bf16 %v374_v18, %v374_v18 }
 0x14d   : > { %641 = vmatmul.mubr.msk.bf16.vlgmr.msra.gmra.mrb[0].mxu0 %vm346_vm0, %v375_v19 }
 0x220   : > { %v436_v21 = vpop.f32.mrb[0].mxu0 }
 0x221   : > { %v437_v22 = vadd.f32 %v625_v20, %v436_v21  ;;  %v642_v23 = vpop.f32.mrb[1].mxu0 }
 0x222   : > { %v439_v24 = vpop.f32.mrb[2].mxu0 }
 0x223   : > { %v442_v25 = vmul.f32 0.35355338, %v437_v22  ;;  %v643_v26 = vpop.f32.mrb[3].mxu0  ;;  %v632_v27 = vpack.c.bf16 %v437_v22, %v437_v22 }
 0x225   : > { %v443_v28 = vpack.c.bf16 %v442_v25, %v442_v25  ;;  %450 = vrot.lane.b32.xlu1 %v632_v27, %s702_s23 }
 0x227   : > { %445 = vst.msk [vmem:[%s327_s22] sm:$0xf] %vm444_vm2, %v443_v28 }
 0x229   : > { %454 = vrot.lane.b32.xlu1 %v632_v27, %s703_s28 }
 0x297   : > { %v451_v29 = vpop.permute.xlu1 %450 }
 0x298   : > { %453 = vst.msk [vmem:[%s334_s24] sm:$0xf] %vm444_vm2, %v451_v29 }
 0x29b   : > { %v455_v30 = vpop.permute.xlu1 %454 }
 0x29c   : > { %457 = vst.msk [vmem:[%s341_s10] sm:$0xf] %vm444_vm2, %v455_v30 }
 0x29d PF: > { %s18_s26 = sadd.s32 1, %s698_s26   ;;  %s813_s24 = smov %s694_s25 }
 0x29e   : > { %p15_p5 = scmp.ge.s32.totalorder %s18_s26, 4   ;;  %s814_s25 = smov %s816_s27 }
 0x2a0   :  { %17 = sbr.rel (!%p15_p5) target bundleno = 2 (0x2), region = 94 }

// kernel: attention_block.3
= control target key start
LH: loop header
LB: loop body
LE: loop exit
PB: predicated region body
PF: predicated region fallthrough
CT: control target
= control target key end

     0   :  { %s2088_s0 = inlined_call_operand.vmem [shape: f32[2,8,32], index: 0, kind: input, shape index: {}]   ;;  %s2089_s1 = inlined_call_operand.vmem [shape: bf16[2,8,32], index: 1, kind: input, shape index: {}]   ;;  %s2090_s2 = inlined_call_operand.vmem [shape: bf16[2,8,32], index: 2, kind: input, shape index: {}]   ;;  %s2091_s3 = inlined_call_operand.vmem [shape: bf16[2,8,32], index: 3, kind: input, shape index: {}]   ;;  %s2092_s4 = inlined_call_operand.vmem [shape: bf16[32,32], index: 4, kind: input, shape index: {}]   ;;  %s2093_s5 = inlined_call_operand.vmem [shape: f32[1,32], index: 5, kind: input, shape index: {}]   ;;  %s2094_s6 = inlined_call_operand.vmem [shape: f32[1,32], index: 6, kind: input, shape index: {}]   ;;  %s2095_s7 = inlined_call_operand.vmem [shape: f32[1,32], index: 7, kind: input, shape index: {}]   ;;  %s2096_s8 = inlined_call_operand.vmem [shape: bf16[32,128], index: 8, kind: input, shape index: {}]   ;;  %s2097_s9 = inlined_call_operand.vmem [shape: f32[1,128], index: 9, kind: input, shape index: {}]   ;;  %s2098_s10 = inlined_call_operand.vmem [shape: bf16[128,32], index: 10, kind: input, shape index: {}]   ;;  %s2099_s11 = inlined_call_operand.vmem [shape: f32[1,32], index: 11, kind: input, shape index: {}]   ;;  %s2100_s12 = inlined_call_operand.hbm [shape: f32[2,8,32], index: 12, kind: output, shape index: {}]  }
   0x1   :  { %2101 = sst [smem:[#allocation6_spill]] %s2088_s0 }
   0x2   :  { %2102 = sst [smem:[#allocation7_spill]] %s2089_s1 }
   0x3   :  { %2103 = sst [smem:[#allocation8_spill]] %s2090_s2 }
   0x4   :  { %17 = vsyncpa [#allocation4], 0 }
   0x5   :  { %19 = vsyncpa [#allocation4 + $0x1], 0  ;;  %s1817_s21 = smov 0   ;;  %s1819_s22 = smov 0  }
   0x6   :  { %s1821_s23 = smov 0   ;;  %s1823_s24 = smov 0  }
   0x7   :  { %s1825_s25 = smov 0   ;;  %s1827_s26 = smov 0  }
   0x8 LB: > { %s1401_s27 = sadd.s32 4294967295, %s1741_s26   ;;  %s1402_s28 = sadd.s32 4294967294, %s1741_s26   ;;  %s1741_s26 = sphi %s1827_s26, %s25_s26   ;;  %s1737_s25 = sphi %s1825_s25, %s2113_s25   ;;  %s1733_s24 = sphi %s1823_s24, %s2112_s24   ;;  %s1729_s23 = sphi %s1821_s23, %s2111_s23   ;;  %s1725_s22 = sphi %s1819_s22, %s2110_s22   ;;  %s1721_s21 = sphi %s1817_s21, %s2109_s21  }
   0x9   : > { %s37_s29 = sadd.s32 1, %s1737_s25  ;;  %s322_s30 = sadd.s32 1, %s1729_s23 }
   0xa   : > { %p39_p0 = scmp.ge.s32.totalorder %s37_s29, 2  ;;  %p332_p1 = scmp.ne.s32.totalorder %s1729_s23, %s1725_s22 }
   0xb   : > { %p333_p2 = scmp.eq.s32.totalorder %s1401_s27, 1  ;;  %p338_p3 = scmp.ne.s32.totalorder %s1725_s22, %s1721_s21 }
   0xc   : > { %s2115_s29 = smov (%p39_p0, %s37_s29), 0  ;;  %p339_p5 = scmp.eq.s32.totalorder %s1402_s28, 1 }
   0xd   : > { %p1857_p4 = por %p333_p2, %p332_p1  ;;  %s317_s14 = ssub.s32 %s1737_s25, %s2115_s29 }
   0xe   : > { %p1405_p6 = scmp.ge.s32.totalorder %s1741_s26, 1  ;;  %p320_p7 = scmp.eq.s32.totalorder %s317_s14, 0 }
   0xf   : > { %p1864_p8 = por %p339_p5, %p338_p3  ;;  %p415_p9 = scmp.lt.s32.totalorder %s1741_s26, 3 }
  0x10   : > { %s1870_s16 = scalar_select %p320_p7, %s1729_s23, %s322_s30  }
  0x11   : > { %p416_p10 = pnand %p1405_p6, %p415_p9 }
  0x12   : > { %p474_p11 = scmp.lt.s32.totalorder (!%p416_p10), %s1733_s24, 1  ;;  %v1743_v0 = vmov (!%p416_p10), 0.0   ;;  %vm1744_vm0 = vmmov (!%p416_p10), 0   ;;  %vm504_vm1 = vcmask (!%p416_p10), 64512   ;;  %s2106_s2 = sld [smem:[#allocation8_spill]] (!%p416_p10)  ;;  %vm569_vm2 = vcmask (!%p416_p10), 1043456  }
  0x13   : > { %419 = sbr.rel (%p416_p10) target bundleno = 2469 (0x9a5), region = 68  ;;  %1482 = vmatprep.subr.bf16.mxu0 (!%p416_p10), %v1743_v0  ;;  %1484 = vmatprep.mubr.msk.bf16.mxu0 (!%p416_p10), %vm1744_vm0, %v1743_v0  ;;  %s2107_s1 = sld [smem:[#allocation7_spill]] (!%p416_p10)  ;;  %vm614_vm3 = vcmask (!%p416_p10), 60416   ;;  %vm745_vm4 = vcmask (!%p416_p10), 126016   ;;  %vm867_vm5 = vcmask (!%p416_p10), 191616   ;;  %vm989_vm6 = vcmask (!%p416_p10), 257216  }
  0x14   : > { %1506 = vmatprep.subr.bf16.mxu1 (!%p416_p10), %v1743_v0  ;;  %1508 = vmatprep.mubr.msk.bf16.mxu1 (!%p416_p10), %vm1744_vm0, %v1743_v0  ;;  %s1745_s19 = smov (!%p416_p10), 120   ;;  %s1746_s20 = smov (!%p416_p10), 112   ;;  %vm1015_vm7 = vcmask (!%p416_p10), 261120  }
  0x15   : > { %s1749_s30 = smov (!%p416_p10), 16   ;;  %s2108_s0 = sld [smem:[#allocation6_spill]] (!%p416_p10) }
  0x16   : > { %s1445_s28 = sshll.u32 (!%p416_p10), %s1733_s24, 7 }
  0x1a   : > { %s1877_s17 = scalar_select %p474_p11, %s1733_s24, 1 }
  0x1c   : > { %s1883_s18 = sshll.u32 %s1877_s17, 2 }
  0x1d   : > { %s491_s27 = scalar_lea.vmem %s2106_s2, %s1883_s18  ;;  %s487_s14 = scalar_lea.vmem %s2107_s1, %s1883_s18 }
  0x1e   : > { %v502_v1 = vld [vmem:[%s491_s27] sm:$0xf]  ;;  %s1747_s27 = smov 104   ;;  %s2040_s1 = scalar_lea.hbm %s2100_s12, %s1445_s28 }
  0x1f   : > { %v509_v2 = vsel %vm504_vm1, %v502_v1, 0  ;;  %v501_v3 = vld [vmem:[%s487_s14] sm:$0xf]  ;;  %v1414_v9 = vcombine.low %v502_v1, %v502_v1  ;;  %s495_s14 = scalar_lea.vmem %s2091_s3, %s1883_s18  ;;  %s1748_s18 = smov 8  }
  0x20   : > { %1483 = vmatpush3.bf16.xpose.msra.mxu0 %v509_v2  ;;  %v1413_v10 = vcombine.low %v501_v3, %v501_v3  ;;  %v1909_v18 = vld [vmem:[%s495_s14] sm:$0xf]  ;;  %s1750_s14 = smov 24  }
  0x21   : > { %1488 = vmatprep.subr.bf16.mxu0 %v1743_v0  ;;  %624 = vrot.lane.b32.xlu1 %v1414_v9, %s1745_s19  ;;  %v571_v19 = vsel %vm569_vm2, %v1909_v18, 0 }
  0x25   : > { %619 = vrot.lane.b32.xlu1 %v1413_v10, %s1745_s19 }
  0x27   : > { %1485 = vmatmul.mubr.msk.bf16.vlgmr.msra.gmra.mrb[0].mxu0 %vm504_vm1, %v501_v3 }
  0x28   : > { %1490 = vmatprep.mubr.msk.bf16.mxu0 %vm1744_vm0, %v1743_v0  ;;  %1489 = vmatpush3.bf16.msra.mxu0 %v571_v19 }
  0x29   : > { %747 = vrot.lane.b32.xlu1 %v1413_v10, %s1746_s20  ;;  %1494 = vmatprep.subr.bf16.mxu0 %v1743_v0 }
  0x2d   : > { %871 = vrot.lane.b32.xlu1 %v1414_v9, %s1747_s27 }
  0x31   : > { %869 = vrot.lane.b32.xlu1 %v1413_v10, %s1747_s27 }
  0x93   : > { %v625_v20 = vpop.permute.xlu1 %624 }
  0x94   : > { %v630_v31 = vsel %vm504_vm1, %v625_v20, 0 }
  0x97   : > { %v620_v21 = vpop.permute.xlu1 %619 }
  0x9b   : > { %v748_v23 = vpop.permute.xlu1 %747 }
  0x9f   : > { %v872_v26 = vpop.permute.xlu1 %871 }
  0xa0   : > { %v877_v28 = vsel %vm504_vm1, %v872_v26, 0 }
  0xa3   : > { %v870_v32 = vpop.permute.xlu1 %869 }
  0xfa   : > { %v545_v4 = vpop.f32.mrb[0].mxu0 }
  0xfb   : > { %v1486_v5 = vpop.f32.mrb[1].mxu0  ;;  %v551_v6 = vsel %vm504_vm1, %v545_v4, -inf }
  0xfc   : > { %552 = vmax.xlane.f32.xlu0 %v551_v6  ;;  %v548_v7 = vpop.f32.mrb[2].mxu0 }
  0xfd   : > { %v1487_v8 = vpop.f32.mrb[3].mxu0 }
 0x189   : > { %v553_v11 = vpop.xlane.xlu0 %552 }
 0x18a   : > { %v554_v12 = vsub.f32 %v545_v4, %v553_v11  ;;  %v1416_v11 = vcombine.low %v1909_v18, %v1909_v18 }
 0x18c   : > { %v555_v13 = vpack.c.bf16 %v554_v12, %v554_v12 }
 0x18e   : > { %v557_v14 = vmul.bf16 1069105081, %v555_v13 }
 0x190   : > { %1643 = vpow.bf16 %v557_v14 }
 0x19b   : > { %v1644_v15 = vpop.eup %1643 }
 0x19c   : > { %v559_v16 = vunpack.c.l.bf16 %v1644_v15 }
 0x19e   : > { %v560_v17 = vsel %vm504_vm1, %v559_v16, 0.0 }
 0x19f   : > { %561 = vadd.xlane.f32.xlu0 %v560_v17 }
 0x1b5   : > { %749 = vrot.lane.b32.xlu0 %v1414_v9, %s1746_s20 }
 0x22c   : > { %v562_v22 = vpop.xlane.xlu0 %561 }
 0x22d   : > { %1645 = vrcp.f32 %v562_v22 }
 0x230   : > { %v750_v24 = vpop.permute.xlu0 %749 }
 0x231   : > { %v755_v25 = vsel %vm504_vm1, %v750_v24, 0 }
 0x232   : > { %1507 = vmatpush3.bf16.xpose.msra.mxu1 %v755_v25 }
 0x233   : > { %1518 = vmatprep.subr.bf16.mxu1 %v1743_v0 }
 0x237   : > { %v1646_v27 = vpop.eup %1645 }
 0x238   : > { %v564_v29 = vpack.c.bf16 %v1646_v27, %v1646_v27 }
 0x239   : > { %1509 = vmatmul.mubr.msk.bf16.vlgmr.msra.gmra.mrb[0].mxu1 %vm504_vm1, %v748_v23 }
 0x23a   : > { %v565_v30 = vmul.bf16 %v1644_v15, %v564_v29  ;;  %1519 = vmatpush3.bf16.xpose.msra.mxu1 %v877_v28  ;;  %1520 = vmatprep.mubr.msk.bf16.mxu1 %vm1744_vm0, %v1743_v0 }
 0x23b   : > { %1530 = vmatprep.subr.bf16.mxu1 %v1743_v0 }
 0x23c   : > { %1491 = vmatmul.mubr.msk.bf16.vlgmr.msra.gmra.mrb[4].mxu0 %vm504_vm1, %v565_v30 }
 0x23d   : > { %1495 = vmatpush3.bf16.xpose.msra.mxu0 %v630_v31  ;;  %1496 = vmatprep.mubr.msk.bf16.mxu0 %vm1744_vm0, %v1743_v0 }
 0x23e   : > { %1500 = vmatprep.subr.bf16.mxu0 %v1743_v0 }
 0x241   : > { %1521 = vmatmul.mubr.msk.bf16.vlgmr.msra.gmra.mrb[4].mxu1 %vm504_vm1, %v870_v32 }
 0x242   : > { %1534 = vmatprep.mubr.msk.bf16.mxu1 %vm1744_vm0, %v1743_v0 }
 0x244   : > { %1497 = vmatmul.mubr.msk.bf16.vlgmr.msra.gmra.mrb[8].mxu0 %vm504_vm1, %v620_v21 }
 0x245   : > { %1502 = vmatprep.mubr.msk.bf16.mxu0 %vm1744_vm0, %v1743_v0 }
 0x30c   : > { %v791_v33 = vpop.f32.mrb[0].mxu1 }
 0x30d   : > { %v1510_v34 = vpop.f32.mrb[1].mxu1  ;;  %v797_v35 = vsel %vm504_vm1, %v791_v33, -inf }
 0x30e   : > { %798 = vmax.xlane.f32.xlu0 %v797_v35  ;;  %v794_v36 = vpop.f32.mrb[2].mxu1  ;;  %v1631_v35 = vld [vmem:[%s2092_s4] sm:$0xff]  }
 0x30f   : > { %v607_v37 = vpop.f32.mrb[4].mxu0  ;;  %v1511_v38 = vpop.f32.mrb[3].mxu1  ;;  %1531 = vmatpush3.bf16.msra.mxu1 %v1631_v35 }
 0x310   : > { %v613_v39 = vpack.c.bf16 %v607_v37, %v607_v37  ;;  %v1492_v40 = vpop.f32.mrb[5].mxu0  ;;  %v1632_v37 = vld [vmem:[%s2092_s4 + $0x8] sm:$0xff]   ;;  %1532 = vmatprep.subr.bf16.mxu1 %v1743_v0 }
 0x311   : > { %v610_v41 = vpop.f32.mrb[6].mxu0 }
 0x312   : > { %615 = vst.msk [vmem:[#allocation2] sm:$0xf] %vm614_vm3, %v613_v39  ;;  %v1493_v42 = vpop.f32.mrb[7].mxu0 }
 0x313   : > { %1533 = vmatpush3.bf16.msra.mxu1 %v1632_v37 }
 0x314   : > { %v913_v43 = vpop.f32.mrb[4].mxu1  ;;  %1546 = vmatprep.subr.bf16.mxu1 %v1743_v0 }
 0x315   : > { %v1522_v44 = vpop.f32.mrb[5].mxu1  ;;  %v919_v52 = vsel %vm504_vm1, %v913_v43, -inf }
 0x316   : > { %v916_v45 = vpop.f32.mrb[6].mxu1 }
 0x317   : > { %v666_v46 = vpop.f32.mrb[8].mxu0  ;;  %v1523_v47 = vpop.f32.mrb[7].mxu1 }
 0x318   : > { %v1498_v48 = vpop.f32.mrb[9].mxu0  ;;  %v672_v49 = vsel %vm504_vm1, %v666_v46, -inf }
 0x319   : > { %673 = vmax.xlane.f32.xlu1 %v672_v49  ;;  %v669_v50 = vpop.f32.mrb[10].mxu0 }
 0x31a   : > { %v1499_v51 = vpop.f32.mrb[11].mxu0 }
 0x31b   : > { %v1425_v51 = vld [vmem:[%s2093_s5] ss:$0 sm:$0xff] }
 0x31d   : > { %920 = vmax.xlane.f32.xlu1 %v919_v52 }
 0x39b   : > { %v799_v53 = vpop.xlane.xlu0 %798 }
 0x39c   : > { %v800_v54 = vsub.f32 %v791_v33, %v799_v53 }
 0x39e   : > { %v801_v55 = vpack.c.bf16 %v800_v54, %v800_v54 }
 0x3a0   : > { %v803_v56 = vmul.bf16 1069105081, %v801_v55 }
 0x3a2   : > { %1647 = vpow.bf16 %v803_v56 }
 0x3a6   : > { %v674_v57 = vpop.xlane.xlu1 %673 }
 0x3a7   : > { %v675_v58 = vsub.f32 %v666_v46, %v674_v57 }
 0x3a9   : > { %v676_v59 = vpack.c.bf16 %v675_v58, %v675_v58 }
 0x3aa   : > { %v921_v60 = vpop.xlane.xlu1 %920 }
 0x3ab   : > { %v922_v61 = vsub.f32 %v913_v43, %v921_v60  ;;  %v678_v62 = vmul.bf16 1069105081, %v676_v59 }
 0x3ad   : > { %v1648_v63 = vpop.eup %1647  ;;  %v923_v1 = vpack.c.bf16 %v922_v61, %v922_v61  ;;  %1649 = vpow.bf16 %v678_v62 }
 0x3ae   : > { %v805_v2 = vunpack.c.l.bf16 %v1648_v63 }
 0x3af   : > { %v925_v3 = vmul.bf16 1069105081, %v923_v1 }
 0x3b0   : > { %v806_v4 = vsel %vm504_vm1, %v805_v2, 0.0  ;;  %v1633_v2 = vld [vmem:[%s2096_s8] sm:$0xff]  }
 0x3b1   : > { %1651 = vpow.bf16 %v925_v3  ;;  %807 = vadd.xlane.f32.xlu0 %v806_v4  ;;  %v1634_v3 = vld [vmem:[%s2096_s8 + $0x8] sm:$0xff]   ;;  %v1635_v4 = vld [vmem:[%s2098_s10] sm:$0xff]  }
 0x3b8   : > { %v1650_v5 = vpop.eup %1649 }
 0x3b9   : > { %v680_v9 = vunpack.c.l.bf16 %v1650_v5 }
 0x3bb   : > { %v681_v10 = vsel %vm504_vm1, %v680_v9, 0.0 }
 0x3bc   : > { %v1652_v6 = vpop.eup %1651 }
 0x3bd   : > { %v927_v7 = vunpack.c.l.bf16 %v1652_v6 }
 0x3bf   : > { %v928_v8 = vsel %vm504_vm1, %v927_v7, 0.0 }
 0x3c0   : > { %929 = vadd.xlane.f32.xlu1 %v928_v8 }
 0x3c4   : > { %682 = vadd.xlane.f32.xlu1 %v681_v10  ;;  %v1429_v10 = vld [vmem:[%s2094_s6] ss:$0 sm:$0xff] }
 0x3c7   : > { %690 = vrot.lane.b32.xlu0 %v1416_v11, %s1745_s19 }
 0x3d5   : > { %812 = vrot.lane.b32.xlu1 %v1416_v11, %s1746_s20  ;;  %s1751_s20 = smov [#allocation3]  }
 0x3d9   : > { %934 = vrot.lane.b32.xlu1 %v1416_v11, %s1747_s27 }
 0x43e   : > { %v808_v12 = vpop.xlane.xlu0 %807 }
 0x442   : > { %v691_v13 = vpop.permute.xlu0 %690 }
 0x443   : > { %v696_v14 = vsel %vm569_vm2, %v691_v13, 0 }
 0x444   : > { %1501 = vmatpush3.bf16.msra.mxu0 %v696_v14 }
 0x445   : > { %1512 = vmatprep.subr.bf16.mxu0 %v1743_v0 }
 0x44d   : > { %v930_v15 = vpop.xlane.xlu1 %929 }
 0x451   : > { %v683_v16 = vpop.xlane.xlu1 %682 }
 0x452   : > { %1653 = vrcp.f32 %v683_v16  ;;  %v1637_v16 = vld [vmem:[%s2098_s10 + $0x10] sm:$0xff]  }
 0x453   : > { %1655 = vrcp.f32 %v808_v12  ;;  %v1430_v12 = vld [vmem:[%s2095_s7] ss:$0 sm:$0xff] }
 0x454   : > { %1657 = vrcp.f32 %v930_v15 }
 0x455   : > { %v813_v18 = vpop.permute.xlu1 %812 }
 0x456   : > { %v818_v21 = vsel %vm569_vm2, %v813_v18, 0  ;;  %v1639_v18 = vld [vmem:[%s2098_s10 + $0x20] sm:$0xff]  }
 0x459   : > { %v935_v24 = vpop.permute.xlu1 %934 }
 0x45a   : > { %v940_v26 = vsel %vm569_vm2, %v935_v24, 0 }
 0x45c   : > { %v1654_v17 = vpop.eup %1653 }
 0x45d   : > { %v685_v19 = vpack.c.bf16 %v1654_v17, %v1654_v17  ;;  %v1656_v22 = vpop.eup %1655  ;;  %v1638_v17 = vld [vmem:[%s2098_s10 + $0x18] sm:$0xff]  }
 0x45e   : > { %v810_v23 = vpack.c.bf16 %v1656_v22, %v1656_v22  ;;  %v1658_v27 = vpop.eup %1657  ;;  %v1431_v22 = vld [vmem:[%s2097_s9] ss:$0 sm:$0xff] }
 0x45f   : > { %v686_v20 = vmul.bf16 %v1650_v5, %v685_v19  ;;  %v932_v28 = vpack.c.bf16 %v1658_v27, %v1658_v27  ;;  %v1636_v5 = vld [vmem:[%s2098_s10 + $0x8] sm:$0xff]  }
 0x460   : > { %v811_v25 = vmul.bf16 %v1648_v63, %v810_v23  ;;  %v1640_v19 = vld [vmem:[%s2098_s10 + $0x28] sm:$0xff]  }
 0x461   : > { %1503 = vmatmul.mubr.msk.bf16.vlgmr.msra.gmra.mrb[12].mxu0 %vm504_vm1, %v686_v20  ;;  %v933_v29 = vmul.bf16 %v1652_v6, %v932_v28  ;;  %v1641_v20 = vld [vmem:[%s2098_s10 + $0x30] sm:$0xff]  }
 0x462   : > { %1513 = vmatpush3.bf16.msra.mxu0 %v818_v21  ;;  %1514 = vmatprep.mubr.msk.bf16.mxu0 %vm1744_vm0, %v1743_v0  ;;  %v1642_v21 = vld [vmem:[%s2098_s10 + $0x38] sm:$0xff]  }
 0x463   : > { %1524 = vmatprep.subr.bf16.mxu0 %v1743_v0 }
 0x469   : > { %1515 = vmatmul.mubr.msk.bf16.vlgmr.msra.gmra.mrb[16].mxu0 %vm504_vm1, %v811_v25 }
 0x46a   : > { %1525 = vmatpush3.bf16.msra.mxu0 %v940_v26  ;;  %1526 = vmatprep.mubr.msk.bf16.mxu0 %vm1744_vm0, %v1743_v0 }
 0x46b   : > { %1538 = vmatprep.subr.bf16.mxu0 %v1743_v0 }
 0x471   : > { %1527 = vmatmul.mubr.msk.bf16.vlgmr.msra.gmra.mrb[20].mxu0 %vm504_vm1, %v933_v29 }
 0x472   : > { %1542 = vmatprep.mubr.msk.bf16.mxu0 %vm1744_vm0, %v1743_v0  ;;  %1539 = vmatpush3.bf16.msra.mxu0 %v1633_v2 }
 0x473   : > { %1540 = vmatprep.subr.bf16.mxu0 %v1743_v0 }
 0x476   : > { %1541 = vmatpush3.bf16.msra.mxu0 %v1634_v3 }
 0x534   : > { %v732_v30 = vpop.f32.mrb[12].mxu0 }
 0x535   : > { %v1448_v31 = vpack.c.bf16 %v732_v30, %v732_v30  ;;  %v1504_v32 = vpop.f32.mrb[13].mxu0 }
 0x536   : > { %v735_v33 = vpop.f32.mrb[14].mxu0 }
 0x537   : > { %742 = vrot.lane.b32.xlu0 %v1448_v31, %s1748_s18  ;;  %v1505_v34 = vpop.f32.mrb[15].mxu0  ;;  %s1407_s18 = sshll.u32 %s1877_s17, 3  ;;  %v1435_v33 = vld [vmem:[%s2099_s11] ss:$0 sm:$0xff] }
 0x538   : > { %s480_s27 = scalar_lea.vmem %s2108_s0, %s1407_s18  ;;  %s471_s18 = sand.u32 1, %s1725_s22  }
 0x539   : > { %v500_v52 = vld [vmem:[%s480_s27] sm:$0xff]  ;;  %s1406_s19 = sshll.u32 %s471_s18, 3  ;;  %s1277_s24 = scalar_lea.sflag [#allocation4], %s471_s18 }
 0x53a   : > { %s1667_s27 = sshll.u32 %s1751_s20, 4  ;;  %s1668_s27 = int_to_ptr.vmem [resolvable:$false] %s1667_s27 }
 0x53b   : > { %s1669_s2 = scalar_lea.vmem %s1668_s27, 256 }
 0x53c   : > { %v854_v36 = vpop.f32.mrb[16].mxu0 }
 0x53d   : > { %v1449_v38 = vpack.c.bf16 %v854_v36, %v854_v36  ;;  %v1516_v39 = vpop.f32.mrb[17].mxu0 }
 0x53e   : > { %v857_v40 = vpop.f32.mrb[18].mxu0 }
 0x53f   : > { %864 = vrot.lane.b32.xlu1 %v1449_v38, %s1749_s30  ;;  %v1517_v41 = vpop.f32.mrb[19].mxu0  ;;  %s473_s30 = scalar_lea.vmem [#allocation3], %s1406_s19 }
 0x540   : > { %s1291_s17 = sshll.u32 %s473_s30, 4  ;;  %s2042_s17 = int_to_ptr.vmem [resolvable:$true] %s1291_s17 }
 0x541   : > { %s1663_s19 = scalar_lea.vmem %s2042_s17, 128  ;;  %p1670_p1 = scmp.lt.s32.totalorder %s2042_s17, %s1668_s27 }
 0x542   : > { %p1664_p12 = scmp.ne.s32.totalorder %s2042_s17, %s1663_s19  ;;  %p1671_p2 = scmp.lt.s32.totalorder %s1669_s2, %s1663_s19 }
 0x544   : > { %v976_v42 = vpop.f32.mrb[20].mxu0  ;;  %p1665_p13 = pnand %p1664_p12, %p1857_p4  ;;  %p1672_p3 = por %p1671_p2, %p1670_p1 }
 0x545   : > { %v1450_v43 = vpack.c.bf16 %v976_v42, %v976_v42  ;;  %v1528_v44 = vpop.f32.mrb[21].mxu0 }
 0x546   : > { %v979_v45 = vpop.f32.mrb[22].mxu0  ;;  %p1666_p0 = pneg %p1665_p13 }
 0x547   : > { %986 = vrot.lane.b32.xlu0 %v1450_v43, %s1750_s14  ;;  %v1529_v46 = vpop.f32.mrb[23].mxu0 }
 0x548   : > { %p1673_p5 = pnand %p1672_p3, %p1666_p0 }
 0x5a9   : > { %v743_v47 = vpop.permute.xlu0 %742 }
 0x5aa   : > { %746 = vst.msk [vmem:[#allocation2] sm:$0xf] %vm745_vm4, %v743_v47 }
 0x5b1   : > { %v865_v48 = vpop.permute.xlu1 %864 }
 0x5b2   : > { %868 = vst.msk [vmem:[#allocation2] sm:$0xf] %vm867_vm5, %v865_v48 }
 0x5b9   : > { %v987_v49 = vpop.permute.xlu0 %986 }
 0x5ba   : > { %990 = vst.msk [vmem:[#allocation2] sm:$0xf] %vm989_vm6, %v987_v49 }
 0x5c1   : > { %v991_v50 = vld [vmem:[#allocation2] sm:$0xf] }
 0x5c2   : > { %1535 = vmatmul.mubr.msk.bf16.vlgmr.msra.gmra.mrb[8].mxu1 %vm1015_vm7, %v991_v50 }
 0x5c3   : > { %1562 = vmatprep.mubr.msk.bf16.mxu1 %vm1744_vm0, %v1743_v0  ;;  %1547 = vmatpush3.bf16.msra.mxu1 %v1635_v4 }
 0x5c4   : > { %1548 = vmatprep.subr.bf16.mxu1 %v1743_v0 }
 0x5c7   : > { %1549 = vmatpush3.bf16.msra.mxu1 %v1636_v5 }
 0x5c8   : > { %1550 = vmatprep.subr.bf16.mxu1 %v1743_v0 }
 0x5cb   : > { %1551 = vmatpush3.bf16.msra.mxu1 %v1637_v16 }
 0x5cc   : > { %1552 = vmatprep.subr.bf16.mxu1 %v1743_v0 }
 0x5cf   : > { %1553 = vmatpush3.bf16.msra.mxu1 %v1638_v17 }
 0x5d0   : > { %1554 = vmatprep.subr.bf16.mxu1 %v1743_v0 }
 0x5d3   : > { %1555 = vmatpush3.bf16.msra.mxu1 %v1639_v18 }
 0x5d4   : > { %1556 = vmatprep.subr.bf16.mxu1 %v1743_v0 }
 0x5d7   : > { %1557 = vmatpush3.bf16.msra.mxu1 %v1640_v19 }
 0x5d8   : > { %1558 = vmatprep.subr.bf16.mxu1 %v1743_v0 }
 0x5db   : > { %1559 = vmatpush3.bf16.msra.mxu1 %v1641_v20 }
 0x5dc   : > { %1560 = vmatprep.subr.bf16.mxu1 %v1743_v0 }
 0x5df   : > { %1561 = vmatpush3.bf16.msra.mxu1 %v1642_v21 }
 0x695   : > { %v1053_v53 = vpop.f32.mrb[8].mxu1 }
 0x696   : > { %v1054_v54 = vadd.f32 %v1425_v51, %v1053_v53  ;;  %v1536_v55 = vpop.f32.mrb[9].mxu1 }
 0x697   : > { %v1056_v56 = vpop.f32.mrb[10].mxu1 }
 0x698   : > { %v1977_v57 = vadd.f32 %v1054_v54, %v500_v52  ;;  %v1537_v58 = vpop.f32.mrb[11].mxu1 }
 0x69a   : > { %v1062_v59 = vsel %vm1015_vm7, %v1977_v57, 0.0 }
 0x69b   : > { %1063 = vadd.xlane.f32.xlu1 %v1062_v59 }
 0x728   : > { %v1064_v60 = vpop.xlane.xlu1 %1063 }
 0x729   : > { %v1066_v61 = vmul.f32 0.03125, %v1064_v60 }
 0x72b   : > { %v1067_v62 = vsub.f32 %v1977_v57, %v1066_v61 }
 0x72d   : > { %v1068_v63 = vmul.f32 %v1067_v62, %v1067_v62 }
 0x72f   : > { %v1069_v1 = vsel %vm1015_vm7, %v1068_v63, 0.0 }
 0x730   : > { %1070 = vadd.xlane.f32.xlu0 %v1069_v1 }
 0x7bd   : > { %v1071_v6 = vpop.xlane.xlu0 %1070 }
 0x7be   : > { %v1072_v7 = vmul.f32 0.03125, %v1071_v6 }
 0x7c0   : > { %v1073_v8 = vadd.f32 1e-05, %v1072_v7 }
 0x7c2   : > { %1659 = vrsqrt.f32 %v1073_v8 }
 0x7cc   : > { %v1660_v9 = vpop.eup %1659 }
 0x7cd   : > { %v1075_v11 = vmul.f32 %v1660_v9, %v1067_v62 }
 0x7cf   : > { %v1082_v13 = vmul.f32 %v1429_v10, %v1075_v11 }
 0x7d1   : > { %v1089_v14 = vadd.f32 %v1430_v12, %v1082_v13 }
 0x7d3   : > { %v1090_v15 = vpack.c.bf16 %v1089_v14, %v1089_v14 }
 0x7d5   : > { %1543 = vmatmul.mubr.msk.bf16.vlgmr.msra.gmra.mrb[24].mxu0 %vm1015_vm7, %v1090_v15 }
 0x8a8   : > { %v1151_v23 = vpop.f32.mrb[24].mxu0 }
 0x8a9   : > { %v1152_v24 = vadd.f32 %v1431_v22, %v1151_v23  ;;  %v1544_v25 = vpop.f32.mrb[25].mxu0 }
 0x8aa   : > { %v1154_v26 = vpop.f32.mrb[26].mxu0 }
 0x8ab   : > { %v1157_v27 = vpack.c.bf16 %v1152_v24, %v1152_v24  ;;  %v1545_v28 = vpop.f32.mrb[27].mxu0 }
 0x8ad   : > { %v1159_v29 = vmul.bf16 1060454197, %v1157_v27  ;;  %v1158_v30 = vmul.bf16 1056980736, %v1157_v27 }
 0x8af   : > { %1661 = verf.bf16 %v1159_v29 }
 0x8ba   : > { %v1662_v0 = vpop.eup %1661 }
 0x8bb   : > { %v1161_v31 = vadd.bf16 1065369472, %v1662_v0 }
 0x8bd   : > { %v1162_v32 = vmul.bf16 %v1161_v31, %v1158_v30 }
 0x8bf   : > { %1563 = vmatmul.mubr.bf16.vlgmr.msra.gmra.mrb[12].mxu1 %v1162_v32 }
 0x992   : > { %v1268_v34 = vpop.f32.mrb[12].mxu1 }
 0x993   : > { %v1269_v35 = vadd.f32 %v1435_v33, %v1268_v34  ;;  %v1564_v36 = vpop.f32.mrb[13].mxu1 }
 0x994   : > { %v1271_v37 = vpop.f32.mrb[14].mxu1 }
 0x995   : > { %v1274_v38 = vadd.f32 %v1269_v35, %v1977_v57  ;;  %v1565_v39 = vpop.f32.mrb[15].mxu1 }
 0x997   : > { %1275 = vst.msk [vmem:[%s473_s30] sm:$0xff] %vm1015_vm7, %v1274_v38 }
 0x998   : > { %1676 = shalt.err (!%p1673_p5)
}
 0x999   : > { %s1677_s0 = scalar_lea.hbm %s2040_s1, 128  ;;  %s1681_s30 = scalar_lea.hbm %s2100_s12, 256 }
 0x99a   : > { %p1678_p6 = scmp.ne.s32.totalorder %s2040_s1, %s1677_s0  ;;  %p1682_p10 = scmp.lt.u32.totalorder %s2040_s1, %s2100_s12 }
 0x99b   : > { %p1683_p11 = scmp.lt.u32.totalorder %s1681_s30, %s1677_s0  ;;  %p1685_p13 = scmp.lt.u32.totalorder %s1677_s0, %s2040_s1 }
 0x99c   : > { %p1679_p7 = pnand %p1678_p6, %p1857_p4 }
 0x99d   : > { %p1684_p12 = por %p1683_p11, %p1682_p10 }
 0x99e   : > { %p1680_p9 = pneg %p1679_p7 }
 0x99f   : > { %p1686_p0 = por %p1685_p13, %p1684_p12 }
 0x9a1   : > { %p1687_p1 = pnand %p1686_p0, %p1680_p9 }
 0x9a3   : > { %1690 = shalt.err (!%p1687_p1)
}
 0x9a4   : > { %1566 = dma.vmem_to_hbm [thread:$0]  (%p1857_p4), %s2042_s17, 128, %s2040_s1, %s1277_s24  }
 0x9a5 PF: > { %p1572_p2 = scmp.ge.s32.totalorder %s1741_s26, 2  ;;  %s1303_s2 = sand.u32 1, %s1721_s21  }
 0x9a6   : > { %s1304_s19 = scalar_lea.sflag [#allocation4], %s1303_s2 }
 0x9a7   : > { %p1569_p3 = pnand %p1572_p2, %p1864_p8 }
 0x9a9   : > { %1716 = dma.done.wait (!%p1569_p3), %s1304_s19, 128  }
 0x9aa   : > { %1718 = vsyncadd (!%p1569_p3), %s1304_s19, 4294967168  ;;  %s25_s26 = sadd.s32 1, %s1741_s26   ;;  %s2109_s21 = smov %s1725_s22 }
 0x9ab   : > { %p22_p5 = scmp.ge.s32.totalorder %s25_s26, 4   ;;  %s2110_s22 = smov %s1729_s23 }
 0x9ac   : > { %s2111_s23 = smov %s1870_s16  ;;  %s2112_s24 = smov %s1737_s25 }
 0x9ad   : > { %s2113_s25 = smov %s2115_s29  ;;  %24 = sbr.rel (!%p22_p5) target bundleno = 8 (0x8), region = 112 }
 0x9b4   :  { %1309 = vsyncpa [#allocation4], 1 }
 0x9b5   :  { %1311 = vsyncpa [#allocation4 + $0x1], 1 }

// kernel: attention_block.2
= control target key start
LH: loop header
LB: loop body
LE: loop exit
PB: predicated region body
PF: predicated region fallthrough
CT: control target
= control target key end

     0   :  { %s744_s24 = smov 0   ;;  %s746_s25 = smov 0   ;;  %s805_s0 = inlined_call_operand.vmem [shape: f32[2,8,32], index: 0, kind: input, shape index: {}]   ;;  %s806_s1 = inlined_call_operand.vmem [shape: f32[1,32], index: 1, kind: input, shape index: {}]   ;;  %s807_s2 = inlined_call_operand.vmem [shape: f32[1,32], index: 2, kind: input, shape index: {}]   ;;  %s808_s3 = inlined_call_operand.vmem [shape: bf16[32,96], index: 3, kind: input, shape index: {}]   ;;  %s809_s4 = inlined_call_operand.vmem [shape: f32[1,96], index: 4, kind: input, shape index: {}]   ;;  %s810_s5 = inlined_call_operand.vmem [shape: bf16[2,8,32], index: 5, kind: output, shape index: {0}]   ;;  %s811_s6 = inlined_call_operand.vmem [shape: bf16[2,8,32], index: 6, kind: output, shape index: {1}]   ;;  %s812_s7 = inlined_call_operand.vmem [shape: bf16[2,8,32], index: 7, kind: output, shape index: {2}]  }
   0x1   :  { %s748_s26 = smov 0  }
   0x2 LB: > { %s30_s27 = sadd.s32 1, %s694_s25  ;;  %p618_p0 = scmp.ge.s32.totalorder %s698_s26, 1  ;;  %s698_s26 = sphi %s748_s26, %s18_s26   ;;  %s694_s25 = sphi %s746_s25, %s814_s25   ;;  %s690_s24 = sphi %s744_s24, %s813_s24  }
   0x3   : > { %p32_p1 = scmp.ge.s32.totalorder %s30_s27, 2  ;;  %p264_p2 = scmp.lt.s32.totalorder %s698_s26, 3 }
   0x5   : > { %s816_s27 = smov (%p32_p1, %s30_s27), 0  ;;  %p265_p3 = pnand %p618_p0, %p264_p2 }
   0x6   : > { %p314_p4 = scmp.lt.s32.totalorder (!%p265_p3), %s690_s24, 1  ;;  %vm346_vm0 = vcmask (!%p265_p3), 261120   ;;  %v672_v7 = vld [vmem:[%s808_s3] sm:$0xff] (!%p265_p3)   ;;  %v700_v8 = vmov (!%p265_p3), 0.0   ;;  %v673_v9 = vld [vmem:[%s808_s3 + $0x8] sm:$0xff] (!%p265_p3)   ;;  %vm701_vm1 = vmmov (!%p265_p3), 0  }
   0x7   : > { %268 = sbr.rel (%p265_p3) target bundleno = 669 (0x29d), region = 40  ;;  %636 = vmatprep.subr.bf16.mxu0 (!%p265_p3), %v700_v8  ;;  %640 = vmatprep.mubr.msk.bf16.mxu0 (!%p265_p3), %vm701_vm1, %v700_v8  ;;  %v623_v14 = vld [vmem:[%s806_s1] ss:$0 sm:$0xff] (!%p265_p3)  ;;  %vm444_vm2 = vcmask (!%p265_p3), 257024   ;;  %s702_s23 = smov (!%p265_p3), 96  }
   0x8   : > { %637 = vmatpush3.bf16.msra.mxu0 (!%p265_p3), %v672_v7  ;;  %v624_v16 = vld [vmem:[%s807_s2] ss:$0 sm:$0xff] (!%p265_p3) }
   0x9   : > { %638 = vmatprep.subr.bf16.mxu0 (!%p265_p3), %v700_v8  ;;  %v625_v20 = vld [vmem:[%s809_s4] ss:$0 sm:$0xff] (!%p265_p3) }
   0xc   : > { %639 = vmatpush3.bf16.msra.mxu0 (!%p265_p3), %v673_v9 }
   0xe   : > { %s818_s24 = smov (!%p314_p4, %s690_s24), 1 }
   0xf   : > { %s619_s28 = sshll.u32 %s818_s24, 3  ;;  %s620_s19 = sshll.u32 %s818_s24, 2 }
  0x10   : > { %s320_s8 = scalar_lea.vmem %s805_s0, %s619_s28  ;;  %s327_s22 = scalar_lea.vmem %s810_s5, %s620_s19 }
  0x11   : > { %v343_v0 = vld [vmem:[%s320_s8] sm:$0xff]  ;;  %s703_s28 = smov 64   ;;  %s334_s24 = scalar_lea.vmem %s811_s6, %s620_s19 }
  0x12   : > { %v347_v1 = vsel %vm346_vm0, %v343_v0, 0.0  ;;  %s341_s10 = scalar_lea.vmem %s812_s7, %s620_s19 }
  0x13   : > { %348 = vadd.xlane.f32.xlu0 %v347_v1 }
  0xa0   : > { %v349_v2 = vpop.xlane.xlu0 %348 }
  0xa1   : > { %v351_v3 = vmul.f32 0.03125, %v349_v2 }
  0xa3   : > { %v352_v4 = vsub.f32 %v343_v0, %v351_v3 }
  0xa5   : > { %v353_v5 = vmul.f32 %v352_v4, %v352_v4 }
  0xa7   : > { %v354_v6 = vsel %vm346_vm0, %v353_v5, 0.0 }
  0xa8   : > { %355 = vadd.xlane.f32.xlu0 %v354_v6 }
 0x135   : > { %v356_v10 = vpop.xlane.xlu0 %355 }
 0x136   : > { %v357_v11 = vmul.f32 0.03125, %v356_v10 }
 0x138   : > { %v358_v12 = vadd.f32 1e-05, %v357_v11 }
 0x13a   : > { %674 = vrsqrt.f32 %v358_v12 }
 0x144   : > { %v675_v13 = vpop.eup %674 }
 0x145   : > { %v360_v15 = vmul.f32 %v675_v13, %v352_v4 }
 0x147   : > { %v367_v17 = vmul.f32 %v623_v14, %v360_v15 }
 0x149   : > { %v374_v18 = vadd.f32 %v624_v16, %v367_v17 }
 0x14b   : > { %v375_v19 = vpack.c.bf16 %v374_v18, %v374_v18 }
 0x14d   : > { %641 = vmatmul.mubr.msk.bf16.vlgmr.msra.gmra.mrb[0].mxu0 %vm346_vm0, %v375_v19 }
 0x220   : > { %v436_v21 = vpop.f32.mrb[0].mxu0 }
 0x221   : > { %v437_v22 = vadd.f32 %v625_v20, %v436_v21  ;;  %v642_v23 = vpop.f32.mrb[1].mxu0 }
 0x222   : > { %v439_v24 = vpop.f32.mrb[2].mxu0 }
 0x223   : > { %v442_v25 = vmul.f32 0.35355338, %v437_v22  ;;  %v643_v26 = vpop.f32.mrb[3].mxu0  ;;  %v632_v27 = vpack.c.bf16 %v437_v22, %v437_v22 }
 0x225   : > { %v443_v28 = vpack.c.bf16 %v442_v25, %v442_v25  ;;  %450 = vrot.lane.b32.xlu1 %v632_v27, %s702_s23 }
 0x227   : > { %445 = vst.msk [vmem:[%s327_s22] sm:$0xf] %vm444_vm2, %v443_v28 }
 0x229   : > { %454 = vrot.lane.b32.xlu1 %v632_v27, %s703_s28 }
 0x297   : > { %v451_v29 = vpop.permute.xlu1 %450 }
 0x298   : > { %453 = vst.msk [vmem:[%s334_s24] sm:$0xf] %vm444_vm2, %v451_v29 }
 0x29b   : > { %v455_v30 = vpop.permute.xlu1 %454 }
 0x29c   : > { %457 = vst.msk [vmem:[%s341_s10] sm:$0xf] %vm444_vm2, %v455_v30 }
 0x29d PF: > { %s18_s26 = sadd.s32 1, %s698_s26   ;;  %s813_s24 = smov %s694_s25 }
 0x29e   : > { %p15_p5 = scmp.ge.s32.totalorder %s18_s26, 4   ;;  %s814_s25 = smov %s816_s27 }
 0x2a0   :  { %17 = sbr.rel (!%p15_p5) target bundleno = 2 (0x2), region = 94 }

// kernel: attention_block.3
= control target key start
LH: loop header
LB: loop body
LE: loop exit
PB: predicated region body
PF: predicated region fallthrough
CT: control target
= control target key end

     0   :  { %s2073_s0 = inlined_call_operand.vmem [shape: f32[2,8,32], index: 0, kind: input, shape index: {}]   ;;  %s2074_s1 = inlined_call_operand.vmem [shape: bf16[2,8,32], index: 1, kind: input, shape index: {}]   ;;  %s2075_s2 = inlined_call_operand.vmem [shape: bf16[2,8,32], index: 2, kind: input, shape index: {}]   ;;  %s2076_s3 = inlined_call_operand.vmem [shape: bf16[2,8,32], index: 3, kind: input, shape index: {}]   ;;  %s2077_s4 = inlined_call_operand.vmem [shape: bf16[32,32], index: 4, kind: input, shape index: {}]   ;;  %s2078_s5 = inlined_call_operand.vmem [shape: f32[1,32], index: 5, kind: input, shape index: {}]   ;;  %s2079_s6 = inlined_call_operand.vmem [shape: f32[1,32], index: 6, kind: input, shape index: {}]   ;;  %s2080_s7 = inlined_call_operand.vmem [shape: f32[1,32], index: 7, kind: input, shape index: {}]   ;;  %s2081_s8 = inlined_call_operand.vmem [shape: bf16[32,128], index: 8, kind: input, shape index: {}]   ;;  %s2082_s9 = inlined_call_operand.vmem [shape: f32[1,128], index: 9, kind: input, shape index: {}]   ;;  %s2083_s10 = inlined_call_operand.vmem [shape: bf16[128,32], index: 10, kind: input, shape index: {}]   ;;  %s2084_s11 = inlined_call_operand.vmem [shape: f32[1,32], index: 11, kind: input, shape index: {}]   ;;  %s2085_s12 = inlined_call_operand.hbm [shape: f32[2,8,32], index: 12, kind: output, shape index: {}]  }
   0x1   :  { %2086 = sst [smem:[#allocation6_spill]] %s2073_s0 }
   0x2   :  { %2087 = sst [smem:[#allocation7_spill]] %s2074_s1 }
   0x3   :  { %2088 = sst [smem:[#allocation8_spill]] %s2075_s2 }
   0x4   :  { %17 = vsyncpa [#allocation4], 0 }
   0x5   :  { %19 = vsyncpa [#allocation4 + $0x1], 0  ;;  %s1802_s21 = smov 0   ;;  %s1804_s22 = smov 0  }
   0x6   :  { %s1806_s23 = smov 0   ;;  %s1808_s24 = smov 0  }
   0x7   :  { %s1810_s25 = smov 0   ;;  %s1812_s26 = smov 0  }
   0x8 LB: > { %s1386_s27 = sadd.s32 4294967295, %s1726_s26   ;;  %s1387_s28 = sadd.s32 4294967294, %s1726_s26   ;;  %s1726_s26 = sphi %s1812_s26, %s25_s26   ;;  %s1722_s25 = sphi %s1810_s25, %s2098_s25   ;;  %s1718_s24 = sphi %s1808_s24, %s2097_s24   ;;  %s1714_s23 = sphi %s1806_s23, %s2096_s23   ;;  %s1710_s22 = sphi %s1804_s22, %s2095_s22   ;;  %s1706_s21 = sphi %s1802_s21, %s2094_s21  }
   0x9   : > { %s37_s29 = sadd.s32 1, %s1722_s25  ;;  %s322_s30 = sadd.s32 1, %s1714_s23 }
   0xa   : > { %p39_p0 = scmp.ge.s32.totalorder %s37_s29, 2  ;;  %p332_p1 = scmp.ne.s32.totalorder %s1714_s23, %s1710_s22 }
   0xb   : > { %p333_p2 = scmp.eq.s32.totalorder %s1386_s27, 1  ;;  %p338_p3 = scmp.ne.s32.totalorder %s1710_s22, %s1706_s21 }
   0xc   : > { %s2100_s29 = smov (%p39_p0, %s37_s29), 0  ;;  %p339_p5 = scmp.eq.s32.totalorder %s1387_s28, 1 }
   0xd   : > { %p1842_p4 = por %p333_p2, %p332_p1  ;;  %s317_s14 = ssub.s32 %s1722_s25, %s2100_s29 }
   0xe   : > { %p1390_p6 = scmp.ge.s32.totalorder %s1726_s26, 1  ;;  %p320_p7 = scmp.eq.s32.totalorder %s317_s14, 0 }
   0xf   : > { %p1849_p8 = por %p339_p5, %p338_p3  ;;  %p415_p9 = scmp.lt.s32.totalorder %s1726_s26, 3 }
  0x10   : > { %s1855_s16 = scalar_select %p320_p7, %s1714_s23, %s322_s30  }
  0x11   : > { %p416_p10 = pnand %p1390_p6, %p415_p9 }
  0x12   : > { %p474_p11 = scmp.lt.s32.totalorder (!%p416_p10), %s1718_s24, 1  ;;  %v1728_v0 = vmov (!%p416_p10), 0.0   ;;  %vm1729_vm0 = vmmov (!%p416_p10), 0   ;;  %vm501_vm1 = vcmask (!%p416_p10), 64512   ;;  %s2091_s2 = sld [smem:[#allocation8_spill]] (!%p416_p10)  ;;  %vm563_vm2 = vcmask (!%p416_p10), 1043456  }
  0x13   : > { %419 = sbr.rel (%p416_p10) target bundleno = 2458 (0x99a), region = 68  ;;  %1467 = vmatprep.subr.bf16.mxu0 (!%p416_p10), %v1728_v0  ;;  %1469 = vmatprep.mubr.msk.bf16.mxu0 (!%p416_p10), %vm1729_vm0, %v1728_v0  ;;  %s2092_s1 = sld [smem:[#allocation7_spill]] (!%p416_p10)  ;;  %vm608_vm3 = vcmask (!%p416_p10), 60416   ;;  %vm736_vm4 = vcmask (!%p416_p10), 126016   ;;  %vm855_vm5 = vcmask (!%p416_p10), 191616   ;;  %vm974_vm6 = vcmask (!%p416_p10), 257216  }
  0x14   : > { %1491 = vmatprep.subr.bf16.mxu1 (!%p416_p10), %v1728_v0  ;;  %1493 = vmatprep.mubr.msk.bf16.mxu1 (!%p416_p10), %vm1729_vm0, %v1728_v0  ;;  %s1730_s19 = smov (!%p416_p10), 120   ;;  %s1731_s20 = smov (!%p416_p10), 112   ;;  %vm1000_vm7 = vcmask (!%p416_p10), 261120  }
  0x15   : > { %s1734_s30 = smov (!%p416_p10), 16   ;;  %s2093_s0 = sld [smem:[#allocation6_spill]] (!%p416_p10) }
  0x16   : > { %s1430_s28 = sshll.u32 (!%p416_p10), %s1718_s24, 7 }
  0x1a   : > { %s1862_s17 = scalar_select %p474_p11, %s1718_s24, 1 }
  0x1c   : > { %s1868_s18 = sshll.u32 %s1862_s17, 2 }
  0x1d   : > { %s491_s27 = scalar_lea.vmem %s2091_s2, %s1868_s18  ;;  %s487_s14 = scalar_lea.vmem %s2092_s1, %s1868_s18 }
  0x1e   : > { %v499_v1 = vld [vmem:[%s491_s27] sm:$0xf]  ;;  %s1732_s27 = smov 104   ;;  %s2025_s1 = scalar_lea.hbm %s2085_s12, %s1430_s28 }
  0x1f   : > { %v506_v2 = vsel %vm501_vm1, %v499_v1, 0  ;;  %v498_v3 = vld [vmem:[%s487_s14] sm:$0xf]  ;;  %v1399_v9 = vcombine.low %v499_v1, %v499_v1  ;;  %s495_s14 = scalar_lea.vmem %s2076_s3, %s1868_s18  ;;  %s1733_s18 = smov 8  }
  0x20   : > { %1468 = vmatpush3.bf16.xpose.msra.mxu0 %v506_v2  ;;  %v1398_v10 = vcombine.low %v498_v3, %v498_v3  ;;  %v1894_v16 = vld [vmem:[%s495_s14] sm:$0xf]  ;;  %s1735_s14 = smov 24  }
  0x21   : > { %1473 = vmatprep.subr.bf16.mxu0 %v1728_v0  ;;  %618 = vrot.lane.b32.xlu1 %v1399_v9, %s1730_s19  ;;  %v565_v17 = vsel %vm563_vm2, %v1894_v16, 0 }
  0x25   : > { %613 = vrot.lane.b32.xlu1 %v1398_v10, %s1730_s19 }
  0x27   : > { %1470 = vmatmul.mubr.msk.bf16.vlgmr.msra.gmra.mrb[0].mxu0 %vm501_vm1, %v498_v3  ;;  %v1401_v3 = vcombine.low %v1894_v16, %v1894_v16 }
  0x28   : > { %1475 = vmatprep.mubr.msk.bf16.mxu0 %vm1729_vm0, %v1728_v0  ;;  %1474 = vmatpush3.bf16.msra.mxu0 %v565_v17 }
  0x29   : > { %738 = vrot.lane.b32.xlu1 %v1398_v10, %s1731_s20  ;;  %1479 = vmatprep.subr.bf16.mxu0 %v1728_v0 }
  0x2d   : > { %859 = vrot.lane.b32.xlu1 %v1399_v9, %s1732_s27 }
  0x31   : > { %857 = vrot.lane.b32.xlu1 %v1398_v10, %s1732_s27 }
  0x93   : > { %v619_v18 = vpop.permute.xlu1 %618 }
  0x94   : > { %v624_v29 = vsel %vm501_vm1, %v619_v18, 0 }
  0x97   : > { %v614_v19 = vpop.permute.xlu1 %613 }
  0x9b   : > { %v739_v21 = vpop.permute.xlu1 %738 }
  0x9f   : > { %v860_v24 = vpop.permute.xlu1 %859 }
  0xa0   : > { %v865_v26 = vsel %vm501_vm1, %v860_v24, 0 }
  0xa3   : > { %v858_v30 = vpop.permute.xlu1 %857 }
  0xfa   : > { %v542_v4 = vpop.f32.mrb[0].mxu0 }
  0xfb   : > { %v1471_v5 = vpop.f32.mrb[1].mxu0  ;;  %v548_v6 = vsel %vm501_vm1, %v542_v4, -inf }
  0xfc   : > { %549 = vmax.xlane.f32.xlu0 %v548_v6  ;;  %v545_v7 = vpop.f32.mrb[2].mxu0 }
  0xfd   : > { %v1472_v8 = vpop.f32.mrb[3].mxu0 }
 0x189   : > { %v550_v11 = vpop.xlane.xlu0 %549 }
 0x18a   : > { %v551_v12 = vsub.f32 %v542_v4, %v550_v11 }
 0x18c   : > { %v552_v13 = vmul.f32 1.442695, %v551_v12 }
 0x18e   : > { %1628 = vpow2.f32 %v552_v13 }
 0x198   : > { %v1629_v14 = vpop.eup %1628 }
 0x199   : > { %v554_v15 = vsel %vm501_vm1, %v1629_v14, 0.0 }
 0x19a   : > { %555 = vadd.xlane.f32.xlu0 %v554_v15 }
 0x1b0   : > { %740 = vrot.lane.b32.xlu0 %v1399_v9, %s1731_s20 }
 0x227   : > { %v556_v20 = vpop.xlane.xlu0 %555 }
 0x228   : > { %1630 = vrcp.f32 %v556_v20 }
 0x22b   : > { %v741_v22 = vpop.permute.xlu0 %740 }
 0x22c   : > { %v746_v23 = vsel %vm501_vm1, %v741_v22, 0 }
 0x22d   : > { %1492 = vmatpush3.bf16.xpose.msra.mxu1 %v746_v23 }
 0x22e   : > { %1503 = vmatprep.subr.bf16.mxu1 %v1728_v0 }
 0x232   : > { %v1631_v25 = vpop.eup %1630 }
 0x233   : > { %v558_v27 = vmul.f32 %v1631_v25, %v1629_v14 }
 0x234   : > { %1494 = vmatmul.mubr.msk.bf16.vlgmr.msra.gmra.mrb[0].mxu1 %vm501_vm1, %v739_v21 }
 0x235   : > { %v559_v28 = vpack.c.bf16 %v558_v27, %v558_v27  ;;  %1504 = vmatpush3.bf16.xpose.msra.mxu1 %v865_v26  ;;  %1505 = vmatprep.mubr.msk.bf16.mxu1 %vm1729_vm0, %v1728_v0  ;;  %v1616_v27 = vld [vmem:[%s2077_s4] sm:$0xff]  }
 0x236   : > { %1515 = vmatprep.subr.bf16.mxu1 %v1728_v0 }
 0x237   : > { %1476 = vmatmul.mubr.msk.bf16.vlgmr.msra.gmra.mrb[4].mxu0 %vm501_vm1, %v559_v28 }
 0x238   : > { %1480 = vmatpush3.bf16.xpose.msra.mxu0 %v624_v29  ;;  %1481 = vmatprep.mubr.msk.bf16.mxu0 %vm1729_vm0, %v1728_v0  ;;  %v1617_v29 = vld [vmem:[%s2077_s4 + $0x8] sm:$0xff]  }
 0x239   : > { %1485 = vmatprep.subr.bf16.mxu0 %v1728_v0 }
 0x23c   : > { %1506 = vmatmul.mubr.msk.bf16.vlgmr.msra.gmra.mrb[4].mxu1 %vm501_vm1, %v858_v30 }
 0x23d   : > { %1519 = vmatprep.mubr.msk.bf16.mxu1 %vm1729_vm0, %v1728_v0  ;;  %1516 = vmatpush3.bf16.msra.mxu1 %v1616_v27 }
 0x23e   : > { %1517 = vmatprep.subr.bf16.mxu1 %v1728_v0 }
 0x23f   : > { %1482 = vmatmul.mubr.msk.bf16.vlgmr.msra.gmra.mrb[8].mxu0 %vm501_vm1, %v614_v19 }
 0x240   : > { %1487 = vmatprep.mubr.msk.bf16.mxu0 %vm1729_vm0, %v1728_v0 }
 0x241   : > { %1518 = vmatpush3.bf16.msra.mxu1 %v1617_v29 }
 0x242   : > { %1531 = vmatprep.subr.bf16.mxu1 %v1728_v0 }
 0x307   : > { %v782_v31 = vpop.f32.mrb[0].mxu1 }
 0x308   : > { %v1495_v32 = vpop.f32.mrb[1].mxu1  ;;  %v788_v33 = vsel %vm501_vm1, %v782_v31, -inf }
 0x309   : > { %789 = vmax.xlane.f32.xlu0 %v788_v33  ;;  %v785_v34 = vpop.f32.mrb[2].mxu1 }
 0x30a   : > { %v601_v35 = vpop.f32.mrb[4].mxu0  ;;  %v1496_v36 = vpop.f32.mrb[3].mxu1 }
 0x30b   : > { %v607_v37 = vpack.c.bf16 %v601_v35, %v601_v35  ;;  %v1477_v38 = vpop.f32.mrb[5].mxu0 }
 0x30c   : > { %v604_v39 = vpop.f32.mrb[6].mxu0 }
 0x30d   : > { %609 = vst.msk [vmem:[#allocation2] sm:$0xf] %vm608_vm3, %v607_v37  ;;  %v1478_v40 = vpop.f32.mrb[7].mxu0 }
 0x30f   : > { %v901_v41 = vpop.f32.mrb[4].mxu1 }
 0x310   : > { %v1507_v42 = vpop.f32.mrb[5].mxu1  ;;  %v907_v50 = vsel %vm501_vm1, %v901_v41, -inf }
 0x311   : > { %v904_v43 = vpop.f32.mrb[6].mxu1 }
 0x312   : > { %v660_v44 = vpop.f32.mrb[8].mxu0  ;;  %v1508_v45 = vpop.f32.mrb[7].mxu1  ;;  %v1410_v43 = vld [vmem:[%s2078_s5] ss:$0 sm:$0xff] }
 0x313   : > { %v1483_v46 = vpop.f32.mrb[9].mxu0  ;;  %v666_v47 = vsel %vm501_vm1, %v660_v44, -inf }
 0x314   : > { %667 = vmax.xlane.f32.xlu1 %v666_v47  ;;  %v663_v48 = vpop.f32.mrb[10].mxu0 }
 0x315   : > { %v1484_v49 = vpop.f32.mrb[11].mxu0 }
 0x318   : > { %908 = vmax.xlane.f32.xlu1 %v907_v50 }
 0x396   : > { %v790_v51 = vpop.xlane.xlu0 %789 }
 0x397   : > { %v791_v52 = vsub.f32 %v782_v31, %v790_v51 }
 0x399   : > { %v792_v53 = vmul.f32 1.442695, %v791_v52 }
 0x39b   : > { %1632 = vpow2.f32 %v792_v53 }
 0x3a1   : > { %v668_v54 = vpop.xlane.xlu1 %667 }
 0x3a2   : > { %v669_v55 = vsub.f32 %v660_v44, %v668_v54 }
 0x3a4   : > { %v670_v60 = vmul.f32 1.442695, %v669_v55 }
 0x3a5   : > { %v1633_v56 = vpop.eup %1632  ;;  %v909_v57 = vpop.xlane.xlu1 %908 }
 0x3a6   : > { %v910_v58 = vsub.f32 %v901_v41, %v909_v57  ;;  %v794_v59 = vsel %vm501_vm1, %v1633_v56, 0.0  ;;  %v1618_v57 = vld [vmem:[%s2081_s8] sm:$0xff]  }
 0x3a7   : > { %795 = vadd.xlane.f32.xlu0 %v794_v59  ;;  %v1620_v59 = vld [vmem:[%s2083_s10] sm:$0xff]  }
 0x3a8   : > { %v911_v61 = vmul.f32 1.442695, %v910_v58  ;;  %v1619_v58 = vld [vmem:[%s2081_s8 + $0x8] sm:$0xff]  }
 0x3aa   : > { %1634 = vpow2.f32 %v911_v61  ;;  %v1622_v61 = vld [vmem:[%s2083_s10 + $0x10] sm:$0xff]  }
 0x3ab   : > { %1636 = vpow2.f32 %v670_v60  ;;  %v1621_v60 = vld [vmem:[%s2083_s10 + $0x8] sm:$0xff]  }
 0x3b4   : > { %v1635_v62 = vpop.eup %1634 }
 0x3b5   : > { %v913_v63 = vsel %vm501_vm1, %v1635_v62, 0.0  ;;  %v1637_v1 = vpop.eup %1636 }
 0x3b6   : > { %914 = vadd.xlane.f32.xlu1 %v913_v63  ;;  %v672_v2 = vsel %vm501_vm1, %v1637_v1, 0.0 }
 0x3ba   : > { %673 = vadd.xlane.f32.xlu1 %v672_v2 }
 0x3bd   : > { %681 = vrot.lane.b32.xlu0 %v1401_v3, %s1730_s19 }
 0x3cb   : > { %800 = vrot.lane.b32.xlu1 %v1401_v3, %s1731_s20  ;;  %s1736_s20 = smov [#allocation3]  }
 0x3cf   : > { %919 = vrot.lane.b32.xlu1 %v1401_v3, %s1732_s27  ;;  %v1414_v3 = vld [vmem:[%s2079_s6] ss:$0 sm:$0xff] }
 0x434   : > { %v796_v4 = vpop.xlane.xlu0 %795 }
 0x438   : > { %v682_v5 = vpop.permute.xlu0 %681 }
 0x439   : > { %v687_v6 = vsel %vm563_vm2, %v682_v5, 0  ;;  %v1415_v5 = vld [vmem:[%s2080_s7] ss:$0 sm:$0xff] }
 0x43a   : > { %1486 = vmatpush3.bf16.msra.mxu0 %v687_v6 }
 0x43b   : > { %1497 = vmatprep.subr.bf16.mxu0 %v1728_v0 }
 0x443   : > { %v915_v7 = vpop.xlane.xlu1 %914 }
 0x447   : > { %v674_v8 = vpop.xlane.xlu1 %673 }
 0x448   : > { %1638 = vrcp.f32 %v674_v8 }
 0x449   : > { %1640 = vrcp.f32 %v796_v4 }
 0x44a   : > { %1642 = vrcp.f32 %v915_v7 }
 0x44b   : > { %v801_v10 = vpop.permute.xlu1 %800 }
 0x44c   : > { %v806_v12 = vsel %vm563_vm2, %v801_v10, 0  ;;  %v1624_v10 = vld [vmem:[%s2083_s10 + $0x20] sm:$0xff]  }
 0x44f   : > { %v920_v16 = vpop.permute.xlu1 %919 }
 0x450   : > { %v925_v17 = vsel %vm563_vm2, %v920_v16, 0 }
 0x452   : > { %v1639_v9 = vpop.eup %1638 }
 0x453   : > { %v676_v11 = vmul.f32 %v1639_v9, %v1637_v1  ;;  %v1641_v14 = vpop.eup %1640  ;;  %v1623_v9 = vld [vmem:[%s2083_s10 + $0x18] sm:$0xff]  }
 0x454   : > { %v798_v15 = vmul.f32 %v1641_v14, %v1633_v56  ;;  %v1643_v19 = vpop.eup %1642  ;;  %v1416_v14 = vld [vmem:[%s2082_s9] ss:$0 sm:$0xff] }
 0x455   : > { %v677_v13 = vpack.c.bf16 %v676_v11, %v676_v11  ;;  %v917_v20 = vmul.f32 %v1643_v19, %v1635_v62  ;;  %v1625_v11 = vld [vmem:[%s2083_s10 + $0x28] sm:$0xff]  }
 0x456   : > { %v799_v18 = vpack.c.bf16 %v798_v15, %v798_v15 }
 0x457   : > { %1488 = vmatmul.mubr.msk.bf16.vlgmr.msra.gmra.mrb[12].mxu0 %vm501_vm1, %v677_v13  ;;  %v918_v21 = vpack.c.bf16 %v917_v20, %v917_v20  ;;  %v1627_v13 = vld [vmem:[%s2083_s10 + $0x38] sm:$0xff]  }
 0x458   : > { %1498 = vmatpush3.bf16.msra.mxu0 %v806_v12  ;;  %1499 = vmatprep.mubr.msk.bf16.mxu0 %vm1729_vm0, %v1728_v0  ;;  %v1626_v12 = vld [vmem:[%s2083_s10 + $0x30] sm:$0xff]  }
 0x459   : > { %1509 = vmatprep.subr.bf16.mxu0 %v1728_v0 }
 0x45f   : > { %1500 = vmatmul.mubr.msk.bf16.vlgmr.msra.gmra.mrb[16].mxu0 %vm501_vm1, %v799_v18 }
 0x460   : > { %1510 = vmatpush3.bf16.msra.mxu0 %v925_v17  ;;  %1511 = vmatprep.mubr.msk.bf16.mxu0 %vm1729_vm0, %v1728_v0 }
 0x461   : > { %1523 = vmatprep.subr.bf16.mxu0 %v1728_v0 }
 0x467   : > { %1512 = vmatmul.mubr.msk.bf16.vlgmr.msra.gmra.mrb[20].mxu0 %vm501_vm1, %v918_v21 }
 0x468   : > { %1527 = vmatprep.mubr.msk.bf16.mxu0 %vm1729_vm0, %v1728_v0  ;;  %1524 = vmatpush3.bf16.msra.mxu0 %v1618_v57 }
 0x469   : > { %1525 = vmatprep.subr.bf16.mxu0 %v1728_v0 }
 0x46c   : > { %1526 = vmatpush3.bf16.msra.mxu0 %v1619_v58 }
 0x52a   : > { %v723_v22 = vpop.f32.mrb[12].mxu0 }
 0x52b   : > { %v1433_v23 = vpack.c.bf16 %v723_v22, %v723_v22  ;;  %v1489_v24 = vpop.f32.mrb[13].mxu0 }
 0x52c   : > { %v726_v25 = vpop.f32.mrb[14].mxu0 }
 0x52d   : > { %733 = vrot.lane.b32.xlu0 %v1433_v23, %s1733_s18  ;;  %v1490_v26 = vpop.f32.mrb[15].mxu0  ;;  %s1392_s18 = sshll.u32 %s1862_s17, 3  ;;  %v1420_v25 = vld [vmem:[%s2084_s11] ss:$0 sm:$0xff] }
 0x52e   : > { %s480_s27 = scalar_lea.vmem %s2093_s0, %s1392_s18  ;;  %s471_s18 = sand.u32 1, %s1710_s22  }
 0x52f   : > { %v497_v44 = vld [vmem:[%s480_s27] sm:$0xff]  ;;  %s1391_s19 = sshll.u32 %s471_s18, 3  ;;  %s1262_s24 = scalar_lea.sflag [#allocation4], %s471_s18 }
 0x530   : > { %s1652_s27 = sshll.u32 %s1736_s20, 4  ;;  %s1653_s27 = int_to_ptr.vmem [resolvable:$false] %s1652_s27 }
 0x531   : > { %s1654_s2 = scalar_lea.vmem %s1653_s27, 256 }
 0x532   : > { %v842_v28 = vpop.f32.mrb[16].mxu0 }
 0x533   : > { %v1434_v30 = vpack.c.bf16 %v842_v28, %v842_v28  ;;  %v1501_v31 = vpop.f32.mrb[17].mxu0 }
 0x534   : > { %v845_v32 = vpop.f32.mrb[18].mxu0 }
 0x535   : > { %852 = vrot.lane.b32.xlu1 %v1434_v30, %s1734_s30  ;;  %v1502_v33 = vpop.f32.mrb[19].mxu0  ;;  %s473_s30 = scalar_lea.vmem [#allocation3], %s1391_s19 }
 0x536   : > { %s1276_s17 = sshll.u32 %s473_s30, 4  ;;  %s2027_s17 = int_to_ptr.vmem [resolvable:$true] %s1276_s17 }
 0x537   : > { %s1648_s19 = scalar_lea.vmem %s2027_s17, 128  ;;  %p1655_p1 = scmp.lt.s32.totalorder %s2027_s17, %s1653_s27 }
 0x538   : > { %p1649_p12 = scmp.ne.s32.totalorder %s2027_s17, %s1648_s19  ;;  %p1656_p2 = scmp.lt.s32.totalorder %s1654_s2, %s1648_s19 }
 0x53a   : > { %v961_v34 = vpop.f32.mrb[20].mxu0  ;;  %p1650_p13 = pnand %p1649_p12, %p1842_p4  ;;  %p1657_p3 = por %p1656_p2, %p1655_p1 }
 0x53b   : > { %v1435_v35 = vpack.c.bf16 %v961_v34, %v961_v34  ;;  %v1513_v36 = vpop.f32.mrb[21].mxu0 }
 0x53c   : > { %v964_v37 = vpop.f32.mrb[22].mxu0  ;;  %p1651_p0 = pneg %p1650_p13 }
 0x53d   : > { %971 = vrot.lane.b32.xlu0 %v1435_v35, %s1735_s14  ;;  %v1514_v38 = vpop.f32.mrb[23].mxu0 }
 0x53e   : > { %p1658_p5 = pnand %p1657_p3, %p1651_p0 }
 0x59f   : > { %v734_v39 = vpop.permute.xlu0 %733 }
 0x5a0   : > { %737 = vst.msk [vmem:[#allocation2] sm:$0xf] %vm736_vm4, %v734_v39 }
 0x5a7   : > { %v853_v40 = vpop.permute.xlu1 %852 }
 0x5a8   : > { %856 = vst.msk [vmem:[#allocation2] sm:$0xf] %vm855_vm5, %v853_v40 }
 0x5af   : > { %v972_v41 = vpop.permute.xlu0 %971 }
 0x5b0   : > { %975 = vst.msk [vmem:[#allocation2] sm:$0xf] %vm974_vm6, %v972_v41 }
 0x5b7   : > { %v976_v42 = vld [vmem:[#allocation2] sm:$0xf] }
 0x5b8   : > { %1520 = vmatmul.mubr.msk.bf16.vlgmr.msra.gmra.mrb[8].mxu1 %vm1000_vm7, %v976_v42 }
 0x5b9   : > { %1547 = vmatprep.mubr.msk.bf16.mxu1 %vm1729_vm0, %v1728_v0  ;;  %1532 = vmatpush3.bf16.msra.mxu1 %v1620_v59 }
 0x5ba   : > { %1533 = vmatprep.subr.bf16.mxu1 %v1728_v0 }
 0x5bd   : > { %1534 = vmatpush3.bf16.msra.mxu1 %v1621_v60 }
 0x5be   : > { %1535 = vmatprep.subr.bf16.mxu1 %v1728_v0 }
 0x5c1   : > { %1536 = vmatpush3.bf16.msra.mxu1 %v1622_v61 }
 0x5c2   : > { %1537 = vmatprep.subr.bf16.mxu1 %v1728_v0 }
 0x5c5   : > { %1538 = vmatpush3.bf16.msra.mxu1 %v1623_v9 }
 0x5c6   : > { %1539 = vmatprep.subr.bf16.mxu1 %v1728_v0 }
 0x5c9   : > { %1540 = vmatpush3.bf16.msra.mxu1 %v1624_v10 }
 0x5ca   : > { %1541 = vmatprep.subr.bf16.mxu1 %v1728_v0 }
 0x5cd   : > { %1542 = vmatpush3.bf16.msra.mxu1 %v1625_v11 }
 0x5ce   : > { %1543 = vmatprep.subr.bf16.mxu1 %v1728_v0 }
 0x5d1   : > { %1544 = vmatpush3.bf16.msra.mxu1 %v1626_v12 }
 0x5d2   : > { %1545 = vmatprep.subr.bf16.mxu1 %v1728_v0 }
 0x5d5   : > { %1546 = vmatpush3.bf16.msra.mxu1 %v1627_v13 }
 0x68b   : > { %v1038_v45 = vpop.f32.mrb[8].mxu1 }
 0x68c   : > { %v1039_v46 = vadd.f32 %v1410_v43, %v1038_v45  ;;  %v1521_v47 = vpop.f32.mrb[9].mxu1 }
 0x68d   : > { %v1041_v48 = vpop.f32.mrb[10].mxu1 }
 0x68e   : > { %v1962_v49 = vadd.f32 %v1039_v46, %v497_v44  ;;  %v1522_v50 = vpop.f32.mrb[11].mxu1 }
 0x690   : > { %v1047_v51 = vsel %vm1000_vm7, %v1962_v49, 0.0 }
 0x691   : > { %1048 = vadd.xlane.f32.xlu1 %v1047_v51 }
 0x71e   : > { %v1049_v52 = vpop.xlane.xlu1 %1048 }
 0x71f   : > { %v1051_v53 = vmul.f32 0.03125, %v1049_v52 }
 0x721   : > { %v1052_v54 = vsub.f32 %v1962_v49, %v1051_v53 }
 0x723   : > { %v1053_v55 = vmul.f32 %v1052_v54, %v1052_v54 }
 0x725   : > { %v1054_v56 = vsel %vm1000_vm7, %v1053_v55, 0.0 }
 0x726   : > { %1055 = vadd.xlane.f32.xlu0 %v1054_v56 }
 0x7b3   : > { %v1056_v62 = vpop.xlane.xlu0 %1055 }
 0x7b4   : > { %v1057_v63 = vmul.f32 0.03125, %v1056_v62 }
 0x7b6   : > { %v1058_v1 = vadd.f32 1e-05, %v1057_v63 }
 0x7b8   : > { %1644 = vrsqrt.f32 %v1058_v1 }
 0x7c2   : > { %v1645_v2 = vpop.eup %1644 }
 0x7c3   : > { %v1060_v4 = vmul.f32 %v1645_v2, %v1052_v54 }
 0x7c5   : > { %v1067_v6 = vmul.f32 %v1414_v3, %v1060_v4 }
 0x7c7   : > { %v1074_v7 = vadd.f32 %v1415_v5, %v1067_v6 }
 0x7c9   : > { %v1075_v8 = vpack.c.bf16 %v1074_v7, %v1074_v7 }
 0x7cb   : > { %1528 = vmatmul.mubr.msk.bf16.vlgmr.msra.gmra.mrb[24].mxu0 %vm1000_vm7, %v1075_v8 }
 0x89e   : > { %v1136_v15 = vpop.f32.mrb[24].mxu0 }
 0x89f   : > { %v1137_v16 = vadd.f32 %v1416_v14, %v1136_v15  ;;  %v1529_v17 = vpop.f32.mrb[25].mxu0 }
 0x8a0   : > { %v1139_v18 = vpop.f32.mrb[26].mxu0 }
 0x8a1   : > { %v1143_v19 = vmul.f32 0.70710677, %v1137_v16  ;;  %v1530_v20 = vpop.f32.mrb[27].mxu0  ;;  %v1142_v0 = vmul.f32 0.5, %v1137_v16 }
 0x8a3   : > { %1646 = verf.f32 %v1143_v19 }
 0x8ad   : > { %v1647_v21 = vpop.eup %1646 }
 0x8ae   : > { %v1145_v22 = vadd.f32 1.0, %v1647_v21 }
 0x8b0   : > { %v1146_v23 = vmul.f32 %v1145_v22, %v1142_v0 }
 0x8b2   : > { %v1147_v24 = vpack.c.bf16 %v1146_v23, %v1146_v23 }
 0x8b4   : > { %1548 = vmatmul.mubr.bf16.vlgmr.msra.gmra.mrb[12].mxu1 %v1147_v24 }
 0x987   : > { %v1253_v26 = vpop.f32.mrb[12].mxu1 }
 0x988   : > { %v1254_v27 = vadd.f32 %v1420_v25, %v1253_v26  ;;  %v1549_v28 = vpop.f32.mrb[13].mxu1 }
 0x989   : > { %v1256_v29 = vpop.f32.mrb[14].mxu1 }
 0x98a   : > { %v1259_v30 = vadd.f32 %v1254_v27, %v1962_v49  ;;  %v1550_v31 = vpop.f32.mrb[15].mxu1 }
 0x98c   : > { %1260 = vst.msk [vmem:[%s473_s30] sm:$0xff] %vm1000_vm7, %v1259_v30 }
 0x98d   : > { %1661 = shalt.err (!%p1658_p5)
}
 0x98e   : > { %s1662_s0 = scalar_lea.hbm %s2025_s1, 128  ;;  %s1666_s30 = scalar_lea.hbm %s2085_s12, 256 }
 0x98f   : > { %p1663_p6 = scmp.ne.s32.totalorder %s2025_s1, %s1662_s0  ;;  %p1667_p10 = scmp.lt.u32.totalorder %s2025_s1, %s2085_s12 }
 0x990   : > { %p1668_p11 = scmp.lt.u32.totalorder %s1666_s30, %s1662_s0  ;;  %p1670_p13 = scmp.lt.u32.totalorder %s1662_s0, %s2025_s1 }
 0x991   : > { %p1664_p7 = pnand %p1663_p6, %p1842_p4 }
 0x992   : > { %p1669_p12 = por %p1668_p11, %p1667_p10 }
 0x993   : > { %p1665_p9 = pneg %p1664_p7 }
 0x994   : > { %p1671_p0 = por %p1670_p13, %p1669_p12 }
 0x996   : > { %p1672_p1 = pnand %p1671_p0, %p1665_p9 }
 0x998   : > { %1675 = shalt.err (!%p1672_p1)
}
 0x999   : > { %1551 = dma.vmem_to_hbm [thread:$0]  (%p1842_p4), %s2027_s17, 128, %s2025_s1, %s1262_s24  }
 0x99a PF: > { %p1557_p2 = scmp.ge.s32.totalorder %s1726_s26, 2  ;;  %s1288_s2 = sand.u32 1, %s1706_s21  }
 0x99b   : > { %s1289_s19 = scalar_lea.sflag [#allocation4], %s1288_s2 }
 0x99c   : > { %p1554_p3 = pnand %p1557_p2, %p1849_p8 }
 0x99e   : > { %1701 = dma.done.wait (!%p1554_p3), %s1289_s19, 128  }
 0x99f   : > { %1703 = vsyncadd (!%p1554_p3), %s1289_s19, 4294967168  ;;  %s25_s26 = sadd.s32 1, %s1726_s26   ;;  %s2094_s21 = smov %s1710_s22 }
 0x9a0   : > { %p22_p5 = scmp.ge.s32.totalorder %s25_s26, 4   ;;  %s2095_s22 = smov %s1714_s23 }
 0x9a1   : > { %s2096_s23 = smov %s1855_s16  ;;  %s2097_s24 = smov %s1722_s25 }
 0x9a2   : > { %s2098_s25 = smov %s2100_s29  ;;  %24 = sbr.rel (!%p22_p5) target bundleno = 8 (0x8), region = 112 }
 0x9a9   :  { %1294 = vsyncpa [#allocation4], 1 }
 0x9aa   :  { %1296 = vsyncpa [#allocation4 + $0x1], 1 }

</bundles_post_ra>
